<compile_context>
chip_gen: v7x
topology: tpu7x:2x2x1
jax: 0.10.0
libtpu: 0.0.40
codegen_flags: <defaults>
</compile_context>

<pallas_src>
import functools

import jax
import jax.numpy as jnp
from jax import lax
from jax.experimental import pallas as pl
from jax.experimental.pallas import tpu as pltpu

# Packed-parameter layout (55 f32 scalars, SMEM):
#   [ 0:20) w1 (10,2) row-major   [20:30) b1 (10,)
#   [30:50) w2 (2,10) row-major   [50:52) b2 (2,)
#   [52:54) w3 (1,2)  row-major   [54]    b3
_W1, _B1, _W2, _B2, _W3, _B3 = 0, 20, 30, 50, 52, 54
_LANES = 128
_CR = 8            # sublane rows per inner-loop chunk -> one (8,128) vreg / value


def mlp_kernel(p_ref, x_ref, o_ref):
    """p_ref: (55,) f32 SMEM (scalar prefetch). x_ref: (2, R, 128). o_ref: (R, 128)."""
    R = o_ref.shape[0]

    # Hoist all parameter scalars out of the chunk loop (loop-invariant sld).
    w1 = [p_ref[_W1 + i] for i in range(20)]
    b1 = [p_ref[_B1 + i] for i in range(10)]
    w2 = [p_ref[_W2 + i] for i in range(20)]
    b2 = [p_ref[_B2 + i] for i in range(2)]
    w3 = [p_ref[_W3 + i] for i in range(2)]
    b3 = p_ref[_B3]

    def chunk(c, carry):
        r0 = pl.multiple_of(c * _CR, _CR)
        x0 = x_ref[0, pl.ds(r0, _CR), :]                 # (8, 128) full vreg
        x1 = x_ref[1, pl.ds(r0, _CR), :]

        # fc1 + relu: 10 independent scalar-splat FMAs (pure VPU, no MXU).
        h1 = [jnp.maximum(w1[2 * o] * x0 + w1[2 * o + 1] * x1 + b1[o], 0.0)
              for o in range(10)]

        # fc2 + relu: tree-reduced 10-term accumulation (short dep chain).
        h2 = []
        for o in range(2):
            t = [w2[10 * o + k] * h1[k] for k in range(10)]
            while len(t) > 1:
                nxt = [t[i] + t[i + 1] for i in range(0, len(t) - 1, 2)]
                if len(t) % 2:
                    nxt.append(t[-1])
                t = nxt
            h2.append(jnp.maximum(t[0] + b2[o], 0.0))

        # fc3 + elementwise cosine (np.cos in the torch module).
        y = w3[0] * h2[0] + w3[1] * h2[1] + b3
        o_ref[pl.ds(r0, _CR), :] = jnp.cos(y)            # dense (8,128) store
        return carry

    lax.fori_loop(0, R // _CR, chunk, 0, unroll=2)


def _pack_params(params):
    return jnp.concatenate([
        params["w1"].reshape(-1), params["b1"],
        params["w2"].reshape(-1), params["b2"],
        params["w3"].reshape(-1), params["b3"],
    ]).astype(jnp.float32)                               # (55,)


@functools.partial(jax.jit, static_argnames=("tb",))
def _net_forward_jit(x, params, tb):
    B = x.shape[0]

    # Pad batch to a multiple of 1024 (full (8,128) vregs). Tile size tb is a
    # multiple of 1024, <= padded batch, and chosen so the grid has >=2 tiles
    # when possible (v7x megacore sharding). Then round the padded batch up to
    # a whole number of tiles.
    bp = pl.cdiv(max(B, 1), 1024) * 1024
    tb = max(1024, (min(tb, bp) // 1024) * 1024)
    if bp // tb < 2 and bp >= 2048:
        tb = max(1024, (bp // 2 // 1024) * 1024)
    bp = pl.cdiv(bp, tb) * tb
    rows, tile_rows = bp // _LANES, tb // _LANES

    p = _pack_params(params)

    # (B, 2) -> (2, rows, 128): per-feature, batch-major slabs. Under jit the
    # transpose + pad + reshape fuse into a single pass over the (tiny) input.
    xt = jnp.pad(x.astype(jnp.float32).T, ((0, 0), (0, bp - B)))
    x3 = xt.reshape(2, rows, _LANES)

    out = pl.pallas_call(
        mlp_kernel,
        out_shape=jax.ShapeDtypeStruct((rows, _LANES), jnp.float32),
        grid_spec=pltpu.PrefetchScalarGridSpec(
            num_scalar_prefetch=1,                       # packed params -> SMEM
            grid=(rows // tile_rows,),
            in_specs=[
                pl.BlockSpec((2, tile_rows, _LANES), lambda i, p: (0, i, 0)),
            ],
            out_specs=pl.BlockSpec((tile_rows, _LANES), lambda i, p: (i, 0)),
        ),
        compiler_params=pltpu.CompilerParams(
            dimension_semantics=("parallel",)),          # v7x: shard over 2 TCs
    )(p, x3)

    # (rows, 128) row-major flattens straight back to batch order: free
    # reshape + contiguous slice, no transpose pass.
    return out.reshape(-1)[:B, None]                     # (B, 1)


def net_forward(x, params, tb=131072):
    """x: (B, 2) f32; params use PyTorch shapes (w: (out,in), b: (out,)).

    Returns (B, 1) f32. (For very small B the launch/DMA overhead dominates;
    callers could dispatch to plain XLA below a batch threshold.)
    """
    return _net_forward_jit(x, params, tb)


def init_params(key):
    """Deterministic init matching nn.Linear shapes (PyTorch-style uniform)."""
    ks = jax.random.split(key, 6)

    def lin(kw, kb, out_f, in_f):
        bound = 1.0 / jnp.sqrt(in_f)
        w = jax.random.uniform(kw, (out_f, in_f), jnp.float32, -bound, bound)
        b = jax.random.uniform(kb, (out_f,), jnp.float32, -bound, bound)
        return w, b

    w1, b1 = lin(ks[0], ks[1], 10, 2)
    w2, b2 = lin(ks[2], ks[3], 2, 10)
    w3, b3 = lin(ks[4], ks[5], 1, 2)
    return {"w1": w1, "b1": b1, "w2": w2, "b2": b2, "w3": w3, "b3": b3}


def net_forward_ref(x, p):
    h1 = jnp.maximum(x @ p["w1"].T + p["b1"], 0.0)
    h2 = jnp.maximum(h1 @ p["w2"].T + p["b2"], 0.0)
    return jnp.cos(h2 @ p["w3"].T + p["b3"])


if __name__ == "__main__":
    key = jax.random.PRNGKey(0)
    k_x, k_p = jax.random.split(key)
    params = init_params(k_p)

    # Multi-tile batch: 4096 -> two (2048-element) tiles, exercising the grid,
    # the inner chunk loop, and the v7x two-TC split.
    B = 4096
    x = jax.random.normal(k_x, (B, 2), jnp.float32)
    out = jax.block_until_ready(net_forward(x, params))
    ref = net_forward_ref(x, params)
    assert out.shape == (B, 1)
    assert jnp.allclose(out, ref, atol=1e-5, rtol=1e-5)

    # Ragged batch to exercise the pad / slice path (single 1024-element tile).
    B2 = 77
    x2 = jax.random.normal(k_x, (B2, 2), jnp.float32)
    out2 = jax.block_until_ready(net_forward(x2, params))
    ref2 = net_forward_ref(x2, params)
    assert out2.shape == (B2, 1)
    assert jnp.allclose(out2, ref2, atol=1e-5, rtol=1e-5)

    print("KERNEL_OK")
</pallas_src>

<mosaic_0001>
module attributes {stable_mosaic.version = 11 : i64} {
  func.func @mlp_kernel(%arg0: i32, %arg1: memref<55xf32, #tpu.memory_space<smem>>, %arg2: memref<2x16x128xf32, #tpu.memory_space<vmem>>, %arg3: memref<16x128xf32, #tpu.memory_space<vmem>>) attributes {dimension_semantics = [#tpu.dimension_semantics<parallel>], iteration_bounds = array<i64: 2>, scalar_prefetch = 1 : i64, scratch_operands = 0 : i64, tpu.core_type = #tpu.core_type<tc>, window_params = [{transform_indices = @transform_0, window_bounds = array<i64: 2, 16, 128>}, {transform_indices = @transform_1, window_bounds = array<i64: 16, 128>}]} {
    %c0 = arith.constant 0 : index
    %0 = memref.load %arg1[%c0] : memref<55xf32, #tpu.memory_space<smem>>
    %c1 = arith.constant 1 : index
    %1 = memref.load %arg1[%c1] : memref<55xf32, #tpu.memory_space<smem>>
    %c2 = arith.constant 2 : index
    %2 = memref.load %arg1[%c2] : memref<55xf32, #tpu.memory_space<smem>>
    %c3 = arith.constant 3 : index
    %3 = memref.load %arg1[%c3] : memref<55xf32, #tpu.memory_space<smem>>
    %c4 = arith.constant 4 : index
    %4 = memref.load %arg1[%c4] : memref<55xf32, #tpu.memory_space<smem>>
    %c5 = arith.constant 5 : index
    %5 = memref.load %arg1[%c5] : memref<55xf32, #tpu.memory_space<smem>>
    %c6 = arith.constant 6 : index
    %6 = memref.load %arg1[%c6] : memref<55xf32, #tpu.memory_space<smem>>
    %c7 = arith.constant 7 : index
    %7 = memref.load %arg1[%c7] : memref<55xf32, #tpu.memory_space<smem>>
    %c8 = arith.constant 8 : index
    %8 = memref.load %arg1[%c8] : memref<55xf32, #tpu.memory_space<smem>>
    %c9 = arith.constant 9 : index
    %9 = memref.load %arg1[%c9] : memref<55xf32, #tpu.memory_space<smem>>
    %c10 = arith.constant 10 : index
    %10 = memref.load %arg1[%c10] : memref<55xf32, #tpu.memory_space<smem>>
    %c11 = arith.constant 11 : index
    %11 = memref.load %arg1[%c11] : memref<55xf32, #tpu.memory_space<smem>>
    %c12 = arith.constant 12 : index
    %12 = memref.load %arg1[%c12] : memref<55xf32, #tpu.memory_space<smem>>
    %c13 = arith.constant 13 : index
    %13 = memref.load %arg1[%c13] : memref<55xf32, #tpu.memory_space<smem>>
    %c14 = arith.constant 14 : index
    %14 = memref.load %arg1[%c14] : memref<55xf32, #tpu.memory_space<smem>>
    %c15 = arith.constant 15 : index
    %15 = memref.load %arg1[%c15] : memref<55xf32, #tpu.memory_space<smem>>
    %c16 = arith.constant 16 : index
    %16 = memref.load %arg1[%c16] : memref<55xf32, #tpu.memory_space<smem>>
    %c17 = arith.constant 17 : index
    %17 = memref.load %arg1[%c17] : memref<55xf32, #tpu.memory_space<smem>>
    %c18 = arith.constant 18 : index
    %18 = memref.load %arg1[%c18] : memref<55xf32, #tpu.memory_space<smem>>
    %c19 = arith.constant 19 : index
    %19 = memref.load %arg1[%c19] : memref<55xf32, #tpu.memory_space<smem>>
    %c20 = arith.constant 20 : index
    %20 = memref.load %arg1[%c20] : memref<55xf32, #tpu.memory_space<smem>>
    %c21 = arith.constant 21 : index
    %21 = memref.load %arg1[%c21] : memref<55xf32, #tpu.memory_space<smem>>
    %c22 = arith.constant 22 : index
    %22 = memref.load %arg1[%c22] : memref<55xf32, #tpu.memory_space<smem>>
    %c23 = arith.constant 23 : index
    %23 = memref.load %arg1[%c23] : memref<55xf32, #tpu.memory_space<smem>>
    %c24 = arith.constant 24 : index
    %24 = memref.load %arg1[%c24] : memref<55xf32, #tpu.memory_space<smem>>
    %c25 = arith.constant 25 : index
    %25 = memref.load %arg1[%c25] : memref<55xf32, #tpu.memory_space<smem>>
    %c26 = arith.constant 26 : index
    %26 = memref.load %arg1[%c26] : memref<55xf32, #tpu.memory_space<smem>>
    %c27 = arith.constant 27 : index
    %27 = memref.load %arg1[%c27] : memref<55xf32, #tpu.memory_space<smem>>
    %c28 = arith.constant 28 : index
    %28 = memref.load %arg1[%c28] : memref<55xf32, #tpu.memory_space<smem>>
    %c29 = arith.constant 29 : index
    %29 = memref.load %arg1[%c29] : memref<55xf32, #tpu.memory_space<smem>>
    %c30 = arith.constant 30 : index
    %30 = memref.load %arg1[%c30] : memref<55xf32, #tpu.memory_space<smem>>
    %c31 = arith.constant 31 : index
    %31 = memref.load %arg1[%c31] : memref<55xf32, #tpu.memory_space<smem>>
    %c32 = arith.constant 32 : index
    %32 = memref.load %arg1[%c32] : memref<55xf32, #tpu.memory_space<smem>>
    %c33 = arith.constant 33 : index
    %33 = memref.load %arg1[%c33] : memref<55xf32, #tpu.memory_space<smem>>
    %c34 = arith.constant 34 : index
    %34 = memref.load %arg1[%c34] : memref<55xf32, #tpu.memory_space<smem>>
    %c35 = arith.constant 35 : index
    %35 = memref.load %arg1[%c35] : memref<55xf32, #tpu.memory_space<smem>>
    %c36 = arith.constant 36 : index
    %36 = memref.load %arg1[%c36] : memref<55xf32, #tpu.memory_space<smem>>
    %c37 = arith.constant 37 : index
    %37 = memref.load %arg1[%c37] : memref<55xf32, #tpu.memory_space<smem>>
    %c38 = arith.constant 38 : index
    %38 = memref.load %arg1[%c38] : memref<55xf32, #tpu.memory_space<smem>>
    %c39 = arith.constant 39 : index
    %39 = memref.load %arg1[%c39] : memref<55xf32, #tpu.memory_space<smem>>
    %c40 = arith.constant 40 : index
    %40 = memref.load %arg1[%c40] : memref<55xf32, #tpu.memory_space<smem>>
    %c41 = arith.constant 41 : index
    %41 = memref.load %arg1[%c41] : memref<55xf32, #tpu.memory_space<smem>>
    %c42 = arith.constant 42 : index
    %42 = memref.load %arg1[%c42] : memref<55xf32, #tpu.memory_space<smem>>
    %c43 = arith.constant 43 : index
    %43 = memref.load %arg1[%c43] : memref<55xf32, #tpu.memory_space<smem>>
    %c44 = arith.constant 44 : index
    %44 = memref.load %arg1[%c44] : memref<55xf32, #tpu.memory_space<smem>>
    %c45 = arith.constant 45 : index
    %45 = memref.load %arg1[%c45] : memref<55xf32, #tpu.memory_space<smem>>
    %c46 = arith.constant 46 : index
    %46 = memref.load %arg1[%c46] : memref<55xf32, #tpu.memory_space<smem>>
    %c47 = arith.constant 47 : index
    %47 = memref.load %arg1[%c47] : memref<55xf32, #tpu.memory_space<smem>>
    %c48 = arith.constant 48 : index
    %48 = memref.load %arg1[%c48] : memref<55xf32, #tpu.memory_space<smem>>
    %c49 = arith.constant 49 : index
    %49 = memref.load %arg1[%c49] : memref<55xf32, #tpu.memory_space<smem>>
    %c50 = arith.constant 50 : index
    %50 = memref.load %arg1[%c50] : memref<55xf32, #tpu.memory_space<smem>>
    %c51 = arith.constant 51 : index
    %51 = memref.load %arg1[%c51] : memref<55xf32, #tpu.memory_space<smem>>
    %c52 = arith.constant 52 : index
    %52 = memref.load %arg1[%c52] : memref<55xf32, #tpu.memory_space<smem>>
    %c53 = arith.constant 53 : index
    %53 = memref.load %arg1[%c53] : memref<55xf32, #tpu.memory_space<smem>>
    %c54 = arith.constant 54 : index
    %54 = memref.load %arg1[%c54] : memref<55xf32, #tpu.memory_space<smem>>
    %c0_i32 = arith.constant 0 : i32
    %c8_i32 = arith.constant 8 : i32
    %55 = arith.muli %c0_i32, %c8_i32 : i32
    %56 = tpu.assume_multiple %55, 8 : i32
    %c0_0 = arith.constant 0 : index
    %57 = arith.index_cast %56 : i32 to index
    %c0_1 = arith.constant 0 : index
    %58 = vector.load %arg2[%c0_0, %57, %c0_1] : memref<2x16x128xf32, #tpu.memory_space<vmem>>, vector<1x8x128xf32>
    %59 = vector.shape_cast %58 : vector<1x8x128xf32> to vector<8x128xf32>
    %c1_2 = arith.constant 1 : index
    %60 = arith.index_cast %56 : i32 to index
    %c0_3 = arith.constant 0 : index
    %61 = vector.load %arg2[%c1_2, %60, %c0_3] : memref<2x16x128xf32, #tpu.memory_space<vmem>>, vector<1x8x128xf32>
    %62 = vector.shape_cast %61 : vector<1x8x128xf32> to vector<8x128xf32>
    %63 = vector.broadcast %0 : f32 to vector<8x128xf32>
    %64 = arith.mulf %63, %59 : vector<8x128xf32>
    %65 = vector.broadcast %1 : f32 to vector<8x128xf32>
    %66 = arith.mulf %65, %62 : vector<8x128xf32>
    %67 = arith.addf %64, %66 : vector<8x128xf32>
    %68 = vector.broadcast %20 : f32 to vector<8x128xf32>
    %69 = arith.addf %67, %68 : vector<8x128xf32>
    %cst = arith.constant 0.000000e+00 : f32
    %70 = vector.broadcast %cst : f32 to vector<8x128xf32>
    %71 = arith.maximumf %69, %70 : vector<8x128xf32>
    %72 = vector.broadcast %2 : f32 to vector<8x128xf32>
    %73 = arith.mulf %72, %59 : vector<8x128xf32>
    %74 = vector.broadcast %3 : f32 to vector<8x128xf32>
    %75 = arith.mulf %74, %62 : vector<8x128xf32>
    %76 = arith.addf %73, %75 : vector<8x128xf32>
    %77 = vector.broadcast %21 : f32 to vector<8x128xf32>
    %78 = arith.addf %76, %77 : vector<8x128xf32>
    %cst_4 = arith.constant 0.000000e+00 : f32
    %79 = vector.broadcast %cst_4 : f32 to vector<8x128xf32>
    %80 = arith.maximumf %78, %79 : vector<8x128xf32>
    %81 = vector.broadcast %4 : f32 to vector<8x128xf32>
    %82 = arith.mulf %81, %59 : vector<8x128xf32>
    %83 = vector.broadcast %5 : f32 to vector<8x128xf32>
    %84 = arith.mulf %83, %62 : vector<8x128xf32>
    %85 = arith.addf %82, %84 : vector<8x128xf32>
    %86 = vector.broadcast %22 : f32 to vector<8x128xf32>
    %87 = arith.addf %85, %86 : vector<8x128xf32>
    %cst_5 = arith.constant 0.000000e+00 : f32
    %88 = vector.broadcast %cst_5 : f32 to vector<8x128xf32>
    %89 = arith.maximumf %87, %88 : vector<8x128xf32>
    %90 = vector.broadcast %6 : f32 to vector<8x128xf32>
    %91 = arith.mulf %90, %59 : vector<8x128xf32>
    %92 = vector.broadcast %7 : f32 to vector<8x128xf32>
    %93 = arith.mulf %92, %62 : vector<8x128xf32>
    %94 = arith.addf %91, %93 : vector<8x128xf32>
    %95 = vector.broadcast %23 : f32 to vector<8x128xf32>
    %96 = arith.addf %94, %95 : vector<8x128xf32>
    %cst_6 = arith.constant 0.000000e+00 : f32
    %97 = vector.broadcast %cst_6 : f32 to vector<8x128xf32>
    %98 = arith.maximumf %96, %97 : vector<8x128xf32>
    %99 = vector.broadcast %8 : f32 to vector<8x128xf32>
    %100 = arith.mulf %99, %59 : vector<8x128xf32>
    %101 = vector.broadcast %9 : f32 to vector<8x128xf32>
    %102 = arith.mulf %101, %62 : vector<8x128xf32>
    %103 = arith.addf %100, %102 : vector<8x128xf32>
    %104 = vector.broadcast %24 : f32 to vector<8x128xf32>
    %105 = arith.addf %103, %104 : vector<8x128xf32>
    %cst_7 = arith.constant 0.000000e+00 : f32
    %106 = vector.broadcast %cst_7 : f32 to vector<8x128xf32>
    %107 = arith.maximumf %105, %106 : vector<8x128xf32>
    %108 = vector.broadcast %10 : f32 to vector<8x128xf32>
    %109 = arith.mulf %108, %59 : vector<8x128xf32>
    %110 = vector.broadcast %11 : f32 to vector<8x128xf32>
    %111 = arith.mulf %110, %62 : vector<8x128xf32>
    %112 = arith.addf %109, %111 : vector<8x128xf32>
    %113 = vector.broadcast %25 : f32 to vector<8x128xf32>
    %114 = arith.addf %112, %113 : vector<8x128xf32>
    %cst_8 = arith.constant 0.000000e+00 : f32
    %115 = vector.broadcast %cst_8 : f32 to vector<8x128xf32>
    %116 = arith.maximumf %114, %115 : vector<8x128xf32>
    %117 = vector.broadcast %12 : f32 to vector<8x128xf32>
    %118 = arith.mulf %117, %59 : vector<8x128xf32>
    %119 = vector.broadcast %13 : f32 to vector<8x128xf32>
    %120 = arith.mulf %119, %62 : vector<8x128xf32>
    %121 = arith.addf %118, %120 : vector<8x128xf32>
    %122 = vector.broadcast %26 : f32 to vector<8x128xf32>
    %123 = arith.addf %121, %122 : vector<8x128xf32>
    %cst_9 = arith.constant 0.000000e+00 : f32
    %124 = vector.broadcast %cst_9 : f32 to vector<8x128xf32>
    %125 = arith.maximumf %123, %124 : vector<8x128xf32>
    %126 = vector.broadcast %14 : f32 to vector<8x128xf32>
    %127 = arith.mulf %126, %59 : vector<8x128xf32>
    %128 = vector.broadcast %15 : f32 to vector<8x128xf32>
    %129 = arith.mulf %128, %62 : vector<8x128xf32>
    %130 = arith.addf %127, %129 : vector<8x128xf32>
    %131 = vector.broadcast %27 : f32 to vector<8x128xf32>
    %132 = arith.addf %130, %131 : vector<8x128xf32>
    %cst_10 = arith.constant 0.000000e+00 : f32
    %133 = vector.broadcast %cst_10 : f32 to vector<8x128xf32>
    %134 = arith.maximumf %132, %133 : vector<8x128xf32>
    %135 = vector.broadcast %16 : f32 to vector<8x128xf32>
    %136 = arith.mulf %135, %59 : vector<8x128xf32>
    %137 = vector.broadcast %17 : f32 to vector<8x128xf32>
    %138 = arith.mulf %137, %62 : vector<8x128xf32>
    %139 = arith.addf %136, %138 : vector<8x128xf32>
    %140 = vector.broadcast %28 : f32 to vector<8x128xf32>
    %141 = arith.addf %139, %140 : vector<8x128xf32>
    %cst_11 = arith.constant 0.000000e+00 : f32
    %142 = vector.broadcast %cst_11 : f32 to vector<8x128xf32>
    %143 = arith.maximumf %141, %142 : vector<8x128xf32>
    %144 = vector.broadcast %18 : f32 to vector<8x128xf32>
    %145 = arith.mulf %144, %59 : vector<8x128xf32>
    %146 = vector.broadcast %19 : f32 to vector<8x128xf32>
    %147 = arith.mulf %146, %62 : vector<8x128xf32>
    %148 = arith.addf %145, %147 : vector<8x128xf32>
    %149 = vector.broadcast %29 : f32 to vector<8x128xf32>
    %150 = arith.addf %148, %149 : vector<8x128xf32>
    %cst_12 = arith.constant 0.000000e+00 : f32
    %151 = vector.broadcast %cst_12 : f32 to vector<8x128xf32>
    %152 = arith.maximumf %150, %151 : vector<8x128xf32>
    %153 = vector.broadcast %30 : f32 to vector<8x128xf32>
    %154 = arith.mulf %153, %71 : vector<8x128xf32>
    %155 = vector.broadcast %31 : f32 to vector<8x128xf32>
    %156 = arith.mulf %155, %80 : vector<8x128xf32>
    %157 = vector.broadcast %32 : f32 to vector<8x128xf32>
    %158 = arith.mulf %157, %89 : vector<8x128xf32>
    %159 = vector.broadcast %33 : f32 to vector<8x128xf32>
    %160 = arith.mulf %159, %98 : vector<8x128xf32>
    %161 = vector.broadcast %34 : f32 to vector<8x128xf32>
    %162 = arith.mulf %161, %107 : vector<8x128xf32>
    %163 = vector.broadcast %35 : f32 to vector<8x128xf32>
    %164 = arith.mulf %163, %116 : vector<8x128xf32>
    %165 = vector.broadcast %36 : f32 to vector<8x128xf32>
    %166 = arith.mulf %165, %125 : vector<8x128xf32>
    %167 = vector.broadcast %37 : f32 to vector<8x128xf32>
    %168 = arith.mulf %167, %134 : vector<8x128xf32>
    %169 = vector.broadcast %38 : f32 to vector<8x128xf32>
    %170 = arith.mulf %169, %143 : vector<8x128xf32>
    %171 = vector.broadcast %39 : f32 to vector<8x128xf32>
    %172 = arith.mulf %171, %152 : vector<8x128xf32>
    %173 = arith.addf %154, %156 : vector<8x128xf32>
    %174 = arith.addf %158, %160 : vector<8x128xf32>
    %175 = arith.addf %162, %164 : vector<8x128xf32>
    %176 = arith.addf %166, %168 : vector<8x128xf32>
    %177 = arith.addf %170, %172 : vector<8x128xf32>
    %178 = arith.addf %173, %174 : vector<8x128xf32>
    %179 = arith.addf %175, %176 : vector<8x128xf32>
    %180 = arith.addf %178, %179 : vector<8x128xf32>
    %181 = arith.addf %180, %177 : vector<8x128xf32>
    %182 = vector.broadcast %50 : f32 to vector<8x128xf32>
    %183 = arith.addf %181, %182 : vector<8x128xf32>
    %cst_13 = arith.constant 0.000000e+00 : f32
    %184 = vector.broadcast %cst_13 : f32 to vector<8x128xf32>
    %185 = arith.maximumf %183, %184 : vector<8x128xf32>
    %186 = vector.broadcast %40 : f32 to vector<8x128xf32>
    %187 = arith.mulf %186, %71 : vector<8x128xf32>
    %188 = vector.broadcast %41 : f32 to vector<8x128xf32>
    %189 = arith.mulf %188, %80 : vector<8x128xf32>
    %190 = vector.broadcast %42 : f32 to vector<8x128xf32>
    %191 = arith.mulf %190, %89 : vector<8x128xf32>
    %192 = vector.broadcast %43 : f32 to vector<8x128xf32>
    %193 = arith.mulf %192, %98 : vector<8x128xf32>
    %194 = vector.broadcast %44 : f32 to vector<8x128xf32>
    %195 = arith.mulf %194, %107 : vector<8x128xf32>
    %196 = vector.broadcast %45 : f32 to vector<8x128xf32>
    %197 = arith.mulf %196, %116 : vector<8x128xf32>
    %198 = vector.broadcast %46 : f32 to vector<8x128xf32>
    %199 = arith.mulf %198, %125 : vector<8x128xf32>
    %200 = vector.broadcast %47 : f32 to vector<8x128xf32>
    %201 = arith.mulf %200, %134 : vector<8x128xf32>
    %202 = vector.broadcast %48 : f32 to vector<8x128xf32>
    %203 = arith.mulf %202, %143 : vector<8x128xf32>
    %204 = vector.broadcast %49 : f32 to vector<8x128xf32>
    %205 = arith.mulf %204, %152 : vector<8x128xf32>
    %206 = arith.addf %187, %189 : vector<8x128xf32>
    %207 = arith.addf %191, %193 : vector<8x128xf32>
    %208 = arith.addf %195, %197 : vector<8x128xf32>
    %209 = arith.addf %199, %201 : vector<8x128xf32>
    %210 = arith.addf %203, %205 : vector<8x128xf32>
    %211 = arith.addf %206, %207 : vector<8x128xf32>
    %212 = arith.addf %208, %209 : vector<8x128xf32>
    %213 = arith.addf %211, %212 : vector<8x128xf32>
    %214 = arith.addf %213, %210 : vector<8x128xf32>
    %215 = vector.broadcast %51 : f32 to vector<8x128xf32>
    %216 = arith.addf %214, %215 : vector<8x128xf32>
    %cst_14 = arith.constant 0.000000e+00 : f32
    %217 = vector.broadcast %cst_14 : f32 to vector<8x128xf32>
    %218 = arith.maximumf %216, %217 : vector<8x128xf32>
    %219 = vector.broadcast %52 : f32 to vector<8x128xf32>
    %220 = arith.mulf %219, %185 : vector<8x128xf32>
    %221 = vector.broadcast %53 : f32 to vector<8x128xf32>
    %222 = arith.mulf %221, %218 : vector<8x128xf32>
    %223 = arith.addf %220, %222 : vector<8x128xf32>
    %224 = vector.broadcast %54 : f32 to vector<8x128xf32>
    %225 = arith.addf %223, %224 : vector<8x128xf32>
    %226 = math.cos %225 : vector<8x128xf32>
    %227 = arith.index_cast %56 : i32 to index
    %c0_15 = arith.constant 0 : index
    %228 = vector.load %arg3[%227, %c0_15] : memref<16x128xf32, #tpu.memory_space<vmem>>, vector<8x128xf32>
    tpu.vector_store %arg3[%227, %c0_15], %226 {strides = array<i32>} : memref<16x128xf32, #tpu.memory_space<vmem>>, vector<8x128xf32>,
    %c1_i32 = arith.constant 1 : i32
    %c8_i32_16 = arith.constant 8 : i32
    %229 = arith.muli %c1_i32, %c8_i32_16 : i32
    %230 = tpu.assume_multiple %229, 8 : i32
    %c0_17 = arith.constant 0 : index
    %231 = arith.index_cast %230 : i32 to index
    %c0_18 = arith.constant 0 : index
    %232 = vector.load %arg2[%c0_17, %231, %c0_18] : memref<2x16x128xf32, #tpu.memory_space<vmem>>, vector<1x8x128xf32>
    %233 = vector.shape_cast %232 : vector<1x8x128xf32> to vector<8x128xf32>
    %c1_19 = arith.constant 1 : index
    %234 = arith.index_cast %230 : i32 to index
    %c0_20 = arith.constant 0 : index
    %235 = vector.load %arg2[%c1_19, %234, %c0_20] : memref<2x16x128xf32, #tpu.memory_space<vmem>>, vector<1x8x128xf32>
    %236 = vector.shape_cast %235 : vector<1x8x128xf32> to vector<8x128xf32>
    %237 = vector.broadcast %0 : f32 to vector<8x128xf32>
    %238 = arith.mulf %237, %233 : vector<8x128xf32>
    %239 = vector.broadcast %1 : f32 to vector<8x128xf32>
    %240 = arith.mulf %239, %236 : vector<8x128xf32>
    %241 = arith.addf %238, %240 : vector<8x128xf32>
    %242 = vector.broadcast %20 : f32 to vector<8x128xf32>
    %243 = arith.addf %241, %242 : vector<8x128xf32>
    %cst_21 = arith.constant 0.000000e+00 : f32
    %244 = vector.broadcast %cst_21 : f32 to vector<8x128xf32>
    %245 = arith.maximumf %243, %244 : vector<8x128xf32>
    %246 = vector.broadcast %2 : f32 to vector<8x128xf32>
    %247 = arith.mulf %246, %233 : vector<8x128xf32>
    %248 = vector.broadcast %3 : f32 to vector<8x128xf32>
    %249 = arith.mulf %248, %236 : vector<8x128xf32>
    %250 = arith.addf %247, %249 : vector<8x128xf32>
    %251 = vector.broadcast %21 : f32 to vector<8x128xf32>
    %252 = arith.addf %250, %251 : vector<8x128xf32>
    %cst_22 = arith.constant 0.000000e+00 : f32
    %253 = vector.broadcast %cst_22 : f32 to vector<8x128xf32>
    %254 = arith.maximumf %252, %253 : vector<8x128xf32>
    %255 = vector.broadcast %4 : f32 to vector<8x128xf32>
    %256 = arith.mulf %255, %233 : vector<8x128xf32>
    %257 = vector.broadcast %5 : f32 to vector<8x128xf32>
    %258 = arith.mulf %257, %236 : vector<8x128xf32>
    %259 = arith.addf %256, %258 : vector<8x128xf32>
    %260 = vector.broadcast %22 : f32 to vector<8x128xf32>
    %261 = arith.addf %259, %260 : vector<8x128xf32>
    %cst_23 = arith.constant 0.000000e+00 : f32
    %262 = vector.broadcast %cst_23 : f32 to vector<8x128xf32>
    %263 = arith.maximumf %261, %262 : vector<8x128xf32>
    %264 = vector.broadcast %6 : f32 to vector<8x128xf32>
    %265 = arith.mulf %264, %233 : vector<8x128xf32>
    %266 = vector.broadcast %7 : f32 to vector<8x128xf32>
    %267 = arith.mulf %266, %236 : vector<8x128xf32>
    %268 = arith.addf %265, %267 : vector<8x128xf32>
    %269 = vector.broadcast %23 : f32 to vector<8x128xf32>
    %270 = arith.addf %268, %269 : vector<8x128xf32>
    %cst_24 = arith.constant 0.000000e+00 : f32
    %271 = vector.broadcast %cst_24 : f32 to vector<8x128xf32>
    %272 = arith.maximumf %270, %271 : vector<8x128xf32>
    %273 = vector.broadcast %8 : f32 to vector<8x128xf32>
    %274 = arith.mulf %273, %233 : vector<8x128xf32>
    %275 = vector.broadcast %9 : f32 to vector<8x128xf32>
    %276 = arith.mulf %275, %236 : vector<8x128xf32>
    %277 = arith.addf %274, %276 : vector<8x128xf32>
    %278 = vector.broadcast %24 : f32 to vector<8x128xf32>
    %279 = arith.addf %277, %278 : vector<8x128xf32>
    %cst_25 = arith.constant 0.000000e+00 : f32
    %280 = vector.broadcast %cst_25 : f32 to vector<8x128xf32>
    %281 = arith.maximumf %279, %280 : vector<8x128xf32>
    %282 = vector.broadcast %10 : f32 to vector<8x128xf32>
    %283 = arith.mulf %282, %233 : vector<8x128xf32>
    %284 = vector.broadcast %11 : f32 to vector<8x128xf32>
    %285 = arith.mulf %284, %236 : vector<8x128xf32>
    %286 = arith.addf %283, %285 : vector<8x128xf32>
    %287 = vector.broadcast %25 : f32 to vector<8x128xf32>
    %288 = arith.addf %286, %287 : vector<8x128xf32>
    %cst_26 = arith.constant 0.000000e+00 : f32
    %289 = vector.broadcast %cst_26 : f32 to vector<8x128xf32>
    %290 = arith.maximumf %288, %289 : vector<8x128xf32>
    %291 = vector.broadcast %12 : f32 to vector<8x128xf32>
    %292 = arith.mulf %291, %233 : vector<8x128xf32>
    %293 = vector.broadcast %13 : f32 to vector<8x128xf32>
    %294 = arith.mulf %293, %236 : vector<8x128xf32>
    %295 = arith.addf %292, %294 : vector<8x128xf32>
    %296 = vector.broadcast %26 : f32 to vector<8x128xf32>
    %297 = arith.addf %295, %296 : vector<8x128xf32>
    %cst_27 = arith.constant 0.000000e+00 : f32
    %298 = vector.broadcast %cst_27 : f32 to vector<8x128xf32>
    %299 = arith.maximumf %297, %298 : vector<8x128xf32>
    %300 = vector.broadcast %14 : f32 to vector<8x128xf32>
    %301 = arith.mulf %300, %233 : vector<8x128xf32>
    %302 = vector.broadcast %15 : f32 to vector<8x128xf32>
    %303 = arith.mulf %302, %236 : vector<8x128xf32>
    %304 = arith.addf %301, %303 : vector<8x128xf32>
    %305 = vector.broadcast %27 : f32 to vector<8x128xf32>
    %306 = arith.addf %304, %305 : vector<8x128xf32>
    %cst_28 = arith.constant 0.000000e+00 : f32
    %307 = vector.broadcast %cst_28 : f32 to vector<8x128xf32>
    %308 = arith.maximumf %306, %307 : vector<8x128xf32>
    %309 = vector.broadcast %16 : f32 to vector<8x128xf32>
    %310 = arith.mulf %309, %233 : vector<8x128xf32>
    %311 = vector.broadcast %17 : f32 to vector<8x128xf32>
    %312 = arith.mulf %311, %236 : vector<8x128xf32>
    %313 = arith.addf %310, %312 : vector<8x128xf32>
    %314 = vector.broadcast %28 : f32 to vector<8x128xf32>
    %315 = arith.addf %313, %314 : vector<8x128xf32>
    %cst_29 = arith.constant 0.000000e+00 : f32
    %316 = vector.broadcast %cst_29 : f32 to vector<8x128xf32>
    %317 = arith.maximumf %315, %316 : vector<8x128xf32>
    %318 = vector.broadcast %18 : f32 to vector<8x128xf32>
    %319 = arith.mulf %318, %233 : vector<8x128xf32>
    %320 = vector.broadcast %19 : f32 to vector<8x128xf32>
    %321 = arith.mulf %320, %236 : vector<8x128xf32>
    %322 = arith.addf %319, %321 : vector<8x128xf32>
    %323 = vector.broadcast %29 : f32 to vector<8x128xf32>
    %324 = arith.addf %322, %323 : vector<8x128xf32>
    %cst_30 = arith.constant 0.000000e+00 : f32
    %325 = vector.broadcast %cst_30 : f32 to vector<8x128xf32>
    %326 = arith.maximumf %324, %325 : vector<8x128xf32>
    %327 = vector.broadcast %30 : f32 to vector<8x128xf32>
    %328 = arith.mulf %327, %245 : vector<8x128xf32>
    %329 = vector.broadcast %31 : f32 to vector<8x128xf32>
    %330 = arith.mulf %329, %254 : vector<8x128xf32>
    %331 = vector.broadcast %32 : f32 to vector<8x128xf32>
    %332 = arith.mulf %331, %263 : vector<8x128xf32>
    %333 = vector.broadcast %33 : f32 to vector<8x128xf32>
    %334 = arith.mulf %333, %272 : vector<8x128xf32>
    %335 = vector.broadcast %34 : f32 to vector<8x128xf32>
    %336 = arith.mulf %335, %281 : vector<8x128xf32>
    %337 = vector.broadcast %35 : f32 to vector<8x128xf32>
    %338 = arith.mulf %337, %290 : vector<8x128xf32>
    %339 = vector.broadcast %36 : f32 to vector<8x128xf32>
    %340 = arith.mulf %339, %299 : vector<8x128xf32>
    %341 = vector.broadcast %37 : f32 to vector<8x128xf32>
    %342 = arith.mulf %341, %308 : vector<8x128xf32>
    %343 = vector.broadcast %38 : f32 to vector<8x128xf32>
    %344 = arith.mulf %343, %317 : vector<8x128xf32>
    %345 = vector.broadcast %39 : f32 to vector<8x128xf32>
    %346 = arith.mulf %345, %326 : vector<8x128xf32>
    %347 = arith.addf %328, %330 : vector<8x128xf32>
    %348 = arith.addf %332, %334 : vector<8x128xf32>
    %349 = arith.addf %336, %338 : vector<8x128xf32>
    %350 = arith.addf %340, %342 : vector<8x128xf32>
    %351 = arith.addf %344, %346 : vector<8x128xf32>
    %352 = arith.addf %347, %348 : vector<8x128xf32>
    %353 = arith.addf %349, %350 : vector<8x128xf32>
    %354 = arith.addf %352, %353 : vector<8x128xf32>
    %355 = arith.addf %354, %351 : vector<8x128xf32>
    %356 = vector.broadcast %50 : f32 to vector<8x128xf32>
    %357 = arith.addf %355, %356 : vector<8x128xf32>
    %cst_31 = arith.constant 0.000000e+00 : f32
    %358 = vector.broadcast %cst_31 : f32 to vector<8x128xf32>
    %359 = arith.maximumf %357, %358 : vector<8x128xf32>
    %360 = vector.broadcast %40 : f32 to vector<8x128xf32>
    %361 = arith.mulf %360, %245 : vector<8x128xf32>
    %362 = vector.broadcast %41 : f32 to vector<8x128xf32>
    %363 = arith.mulf %362, %254 : vector<8x128xf32>
    %364 = vector.broadcast %42 : f32 to vector<8x128xf32>
    %365 = arith.mulf %364, %263 : vector<8x128xf32>
    %366 = vector.broadcast %43 : f32 to vector<8x128xf32>
    %367 = arith.mulf %366, %272 : vector<8x128xf32>
    %368 = vector.broadcast %44 : f32 to vector<8x128xf32>
    %369 = arith.mulf %368, %281 : vector<8x128xf32>
    %370 = vector.broadcast %45 : f32 to vector<8x128xf32>
    %371 = arith.mulf %370, %290 : vector<8x128xf32>
    %372 = vector.broadcast %46 : f32 to vector<8x128xf32>
    %373 = arith.mulf %372, %299 : vector<8x128xf32>
    %374 = vector.broadcast %47 : f32 to vector<8x128xf32>
    %375 = arith.mulf %374, %308 : vector<8x128xf32>
    %376 = vector.broadcast %48 : f32 to vector<8x128xf32>
    %377 = arith.mulf %376, %317 : vector<8x128xf32>
    %378 = vector.broadcast %49 : f32 to vector<8x128xf32>
    %379 = arith.mulf %378, %326 : vector<8x128xf32>
    %380 = arith.addf %361, %363 : vector<8x128xf32>
    %381 = arith.addf %365, %367 : vector<8x128xf32>
    %382 = arith.addf %369, %371 : vector<8x128xf32>
    %383 = arith.addf %373, %375 : vector<8x128xf32>
    %384 = arith.addf %377, %379 : vector<8x128xf32>
    %385 = arith.addf %380, %381 : vector<8x128xf32>
    %386 = arith.addf %382, %383 : vector<8x128xf32>
    %387 = arith.addf %385, %386 : vector<8x128xf32>
    %388 = arith.addf %387, %384 : vector<8x128xf32>
    %389 = vector.broadcast %51 : f32 to vector<8x128xf32>
    %390 = arith.addf %388, %389 : vector<8x128xf32>
    %cst_32 = arith.constant 0.000000e+00 : f32
    %391 = vector.broadcast %cst_32 : f32 to vector<8x128xf32>
    %392 = arith.maximumf %390, %391 : vector<8x128xf32>
    %393 = vector.broadcast %52 : f32 to vector<8x128xf32>
    %394 = arith.mulf %393, %359 : vector<8x128xf32>
    %395 = vector.broadcast %53 : f32 to vector<8x128xf32>
    %396 = arith.mulf %395, %392 : vector<8x128xf32>
    %397 = arith.addf %394, %396 : vector<8x128xf32>
    %398 = vector.broadcast %54 : f32 to vector<8x128xf32>
    %399 = arith.addf %397, %398 : vector<8x128xf32>
    %400 = math.cos %399 : vector<8x128xf32>
    %401 = arith.index_cast %230 : i32 to index
    %c0_33 = arith.constant 0 : index
    %402 = vector.load %arg3[%401, %c0_33] : memref<16x128xf32, #tpu.memory_space<vmem>>, vector<8x128xf32>
    tpu.vector_store %arg3[%401, %c0_33], %400 {strides = array<i32>} : memref<16x128xf32, #tpu.memory_space<vmem>>, vector<8x128xf32>,
    %c2_i32 = arith.constant 2 : i32
    return
  }
  func.func @transform_0(%arg0: i32, %arg1: memref<55xf32, #tpu.memory_space<smem>>) -> (i32, i32, i32) {
    %c0_i32 = arith.constant 0 : i32
    %c0_i32_0 = arith.constant 0 : i32
    %c0_i32_1 = arith.constant 0 : i32
    return %c0_i32, %arg0, %c0_i32_0 : i32, i32, i32
  }
  func.func @transform_1(%arg0: i32, %arg1: memref<55xf32, #tpu.memory_space<smem>>) -> (i32, i32) {
    %c0_i32 = arith.constant 0 : i32
    %c0_i32_0 = arith.constant 0 : i32
    return %arg0, %c0_i32 : i32, i32
  }
}

</mosaic_0001>

<bundles_post_ra>
// kernel: _net_forward_jit.1
= control target key start
LH: loop header
LB: loop body
LE: loop exit
PB: predicated region body
PF: predicated region fallthrough
CT: control target
= control target key end

     0   :  { %s1728_s0 = inlined_call_operand.vmem [shape: f32[55], index: 0, kind: input, shape index: {}]   ;;  %s1729_s1 = inlined_call_operand.vmem [shape: f32[2,32,128], index: 1, kind: input, shape index: {}]   ;;  %s1730_s2 = inlined_call_operand.hbm [shape: f32[32,128], index: 2, kind: output, shape index: {}]  }
   0x1   :  { %1783 = sst [smem:[#allocation45_spill]] %s1729_s1  ;;  %s7_s11 = sshll.u32 %s1728_s0, 4  ;;  %s8_s11 = int_to_ptr.vmem [resolvable:$true] %s7_s11 }
   0x2   :  { %1784 = sst [smem:[#allocation46_spill]] %s1730_s2  ;;  %s921_s12 = scalar_lea.vmem %s8_s11, 16 }
   0x3   :  { %p922_p0 = scmp.ne.s32.totalorder %s8_s11, %s921_s12  ;;  %p926_p1 = scmp.lt.s32.totalorder %s8_s11, %s8_s11 }
   0x4   :  { %p927_p2 = scmp.lt.s32.totalorder %s921_s12, %s921_s12 }
   0x6   :  { %p928_p3 = por %p927_p2, %p926_p1 }
   0x8   :  { %p929_p4 = pnand %p928_p3, %p922_p0 }
   0xa   :  { %932 = shalt.err (!%p929_p4)  }
   0xb   :  { %s999_s13 = smov [#allocation3]  }
   0xc   :  { %10 = dma.vmem_to_smem %s8_s11, 16, %s999_s13, [#allocation2] }
   0xd   :  { %977 = dma.done.wait [#allocation2], 16 }
   0xe   :  { %978 = vsyncadd [#allocation2], 4294967280 }
   0xf   :  { %12 = sfence }
  0x10   :  { %13 = vsyncpa [#allocation6], 0 }
  0x11   :  { %15 = vsyncpa [#allocation6 + $0x1], 0  ;;  %s1027_s14 = smov 0   ;;  %s1029_s15 = smov 0  }
  0x12   :  { %s1031_s0 = smov 0   ;;  %s1033_s16 = smov 0  }
  0x13 LB: > { %1785 = sst [smem:[#allocation9_spill]] %s985_s14  ;;  %s1731_s17 = sadd.s32 4294967295, %s997_s16   ;;  %s997_s16 = sphi %s1033_s16, %s1873_s16   ;;  %s993_s0 = sphi %s1031_s0, %s1876_s0   ;;  %s989_s15 = sphi %s1029_s15, %s1875_s15   ;;  %s985_s14 = sphi %s1027_s14, %s1874_s14  }
  0x14   : > { %1786 = sst [smem:[#allocation10_spill]] %s989_s15  ;;  %s775_s18 = sadd.s32 4294967294, %s997_s16  }
  0x15   : > { %1787 = sst [smem:[#allocation11_spill]] %s993_s0  ;;  %s1050_s19 = sadd.s32 1, %s997_s16  }
  0x16   : > { %1788 = sst [smem:[#allocation12_spill]] %s997_s16  ;;  %s28_s20 = sadd.s32 1, %s993_s0 }
  0x17   : > { %1789 = sst [smem:[#allocation13_spill]] %s1050_s19  ;;  %s25_s21 = ssub.s32 %s997_s16, %s1050_s19 }
  0x18   : > { %p35_p5 = scmp.ne.s32.totalorder %s993_s0, %s989_s15  ;;  %p26_p6 = scmp.eq.s32.totalorder %s25_s21, 0 }
  0x19   : > { %p36_p7 = scmp.eq.s32.totalorder %s997_s16, 0  ;;  %p65_p8 = scmp.eq.s32.totalorder %s1731_s17, 1 }
  0x1a   : > { %p70_p9 = scmp.ne.s32.totalorder %s989_s15, %s985_s14  ;;  %p71_p12 = scmp.eq.s32.totalorder %s775_s18, 1 }
  0x1b   : > { %s1063_s22 = scalar_select %p26_p6, %s993_s0, %s28_s20  }
  0x1c   : > { %p37_p10 = por %p36_p7, %p35_p5  ;;  %p1065_p11 = por %p65_p8, %p35_p5 }
  0x1d   : > { %1790 = sst [smem:[#allocation14_spill]] %s1063_s22  ;;  %p1069_p13 = por %p71_p12, %p70_p9 }
  0x1e   : > { %s1791_s23 = scalar_select %p1065_p11, 1, 0 }
  0x1f   : > { %s1793_s24 = scalar_select %p1069_p13, 1, 0 }
  0x20   : > { %1792 = sst [smem:[#allocation15_spill]] %s1791_s23  ;;  %p777_p0 = scmp.ge.s32.totalorder %s997_s16, 2 }
  0x21   : > { %1794 = sst [smem:[#allocation16_spill]] %s1793_s24 }
  0x22   : > { %87 = sbr.rel (%p777_p0) target bundleno = 53 (0x35), region = 16 }
  0x29   : > { %90 = sbr.rel (!%p37_p10) target bundleno = 53 (0x35), region = 20  ;;  %s92_s25 = sand.u32 (%p37_p10), 1, %s993_s0  }
  0x2a   : > { %s855_s26 = sshll.u32 (%p37_p10), %s997_s16, 4  ;;  %s778_s27 = sshll.u32 (%p37_p10), %s92_s25, 5 }
  0x2b   : > { %s1795_s1 = sld [smem:[#allocation45_spill]] (%p37_p10)  ;;  %s94_s3 = scalar_lea.vmem (%p37_p10), [#allocation4], %s778_s27 }
  0x31   : > { %s97_s30 = scalar_lea.vmem %s1795_s1, %s855_s26 }
  0x32   : > { %v131_v0 = vld [vmem:[%s97_s30] sm:$0xff]  ;;  %v133_v1 = vld [vmem:[%s97_s30 + $0x8] sm:$0xff] }
  0x33   : > { %v135_v2 = vld [vmem:[%s97_s30 + $0x20] sm:$0xff]  ;;  %132 = vst [vmem:[%s94_s3] sm:$0xff] %v131_v0  ;;  %134 = vst [vmem:[%s94_s3 + $0x8] sm:$0xff] %v133_v1  ;;  %v137_v3 = vld [vmem:[%s97_s30 + $0x28] sm:$0xff] }
  0x34   : > { %136 = vst [vmem:[%s94_s3 + $0x10] sm:$0xff] %v135_v2  ;;  %138 = vst [vmem:[%s94_s3 + $0x18] sm:$0xff] %v137_v3 }
  0x35 PF: > { %p781_p1 = scmp.ge.s32.totalorder %s997_s16, 1  ;;  %p143_p2 = scmp.lt.s32.totalorder %s997_s16, 3 }
  0x37   : > { %p144_p3 = pnand %p781_p1, %p143_p2 }
  0x39   : > { %147 = sbr.rel (%p144_p3) target bundleno = 260 (0x104), region = 58 }
  0x40   : > { %s1084_s4 = sand.u32 1, %s989_s15   ;;  %s171_s5 = sld [smem:[#allocation3]] }
  0x41   : > { %1796 = sst [smem:[#allocation17_spill]] %s1084_s4  ;;  %s782_s6 = sshll.u32 %s1084_s4, 5 }
  0x42   : > { %s1087_s7 = sld [smem:[#allocation3 + $0x1]]  ;;  %s1089_s8 = sld [smem:[#allocation3 + $0x2]] }
  0x43   : > { %s1091_s9 = sld [smem:[#allocation3 + $0x3]]  ;;  %s1093_s10 = sld [smem:[#allocation3 + $0x4]] }
  0x44   : > { %s1095_s11 = sld [smem:[#allocation3 + $0x5]]  ;;  %s1097_s12 = sld [smem:[#allocation3 + $0x6]] }
  0x45   : > { %s1099_s13 = scalar_lea.vmem [#allocation4], %s782_s6  ;;  %s1104_s18 = sld [smem:[#allocation3 + $0x7]] }
  0x46   : > { %v1102_v4 = vld [vmem:[%s1099_s13] sm:$0xff]  ;;  %s1106_s20 = sld [smem:[#allocation3 + $0x8]]  ;;  %v230_v5 = vstv %s171_s5  ;;  %v1109_v6 = vld [vmem:[%s1099_s13 + $0x8] sm:$0xff]  ;;  %s1111_s21 = sld [smem:[#allocation3 + $0x9]]  ;;  %v1116_v7 = vld [vmem:[%s1099_s13 + $0x10] sm:$0xff] }
  0x47   : > { %s1113_s25 = sld [smem:[#allocation3 + $0xa]]  ;;  %s1118_s26 = sld [smem:[#allocation3 + $0xb]]  ;;  %v231_v8 = vmul.f32 %v230_v5, %v1102_v4  ;;  %v1130_v11 = vmul.f32 %v1109_v6, %v230_v5 }
  0x48   : > { %s1120_s27 = sld [smem:[#allocation3 + $0xc]]  ;;  %s1123_s28 = sld [smem:[#allocation3 + $0xd]]  ;;  %v232_v9 = vstv %s1087_s7  ;;  %v238_v10 = vstv %s1089_s8 }
  0x49   : > { %s1125_s29 = sld [smem:[#allocation3 + $0xe]]  ;;  %s1132_s30 = sld [smem:[#allocation3 + $0xf]]  ;;  %v233_v12 = vmul.f32 %v1116_v7, %v232_v9  ;;  %v239_v13 = vmul.f32 %v238_v10, %v1102_v4  ;;  %v240_v14 = vstv %s1091_s9  ;;  %v246_v15 = vstv %s1093_s10 }
  0x4a   : > { %s1134_s3 = sld [smem:[#allocation3 + $0x10]]  ;;  %v241_v16 = vmul.f32 %v1116_v7, %v240_v14  ;;  %v247_v17 = vmul.f32 %v246_v15, %v1102_v4  ;;  %v248_v18 = vstv %s1095_s11  ;;  %v254_v19 = vstv %s1097_s12  ;;  %s1152_s5 = sld [smem:[#allocation3 + $0x11]] }
  0x4b   : > { %s1154_s6 = sld [smem:[#allocation3 + $0x14]]  ;;  %v234_v20 = vadd.f32 %v233_v12, %v231_v8  ;;  %v249_v21 = vmul.f32 %v1116_v7, %v248_v18  ;;  %v255_v22 = vmul.f32 %v254_v19, %v1102_v4  ;;  %v256_v23 = vstv %s1104_s18  ;;  %s1163_s17 = sld [smem:[#allocation3 + $0x15]] }
  0x4c   : > { %s1165_s1 = sld [smem:[#allocation3 + $0x16]]  ;;  %v242_v24 = vadd.f32 %v241_v16, %v239_v13  ;;  %v257_v25 = vmul.f32 %v1116_v7, %v256_v23  ;;  %v262_v26 = vstv %s1106_s20  ;;  %v264_v27 = vstv %s1111_s21  ;;  %s1172_s22 = sld [smem:[#allocation3 + $0x17]] }
  0x4d   : > { %1797 = sst [smem:[#allocation18_spill]] %s1113_s25  ;;  %s1174_s0 = sld [smem:[#allocation3 + $0x18]]  ;;  %v250_v28 = vadd.f32 %v249_v21, %v247_v17  ;;  %v263_v29 = vmul.f32 %v262_v26, %v1102_v4  ;;  %v265_v30 = vmul.f32 %v1116_v7, %v264_v27  ;;  %v270_v31 = vstv %s1113_s25 }
  0x4e   : > { %1798 = sst [smem:[#allocation19_spill]] %s1118_s26  ;;  %s1183_s15 = sld [smem:[#allocation3 + $0x19]]  ;;  %v258_v32 = vadd.f32 %v257_v25, %v255_v22  ;;  %v271_v33 = vmul.f32 %v270_v31, %v1102_v4  ;;  %v272_v34 = vstv %s1118_s26  ;;  %v278_v35 = vstv %s1120_s27 }
  0x4f   : > { %1799 = sst [smem:[#allocation20_spill]] %s1120_s27  ;;  %s1185_s19 = sld [smem:[#allocation3 + $0x1a]]  ;;  %v266_v36 = vadd.f32 %v265_v30, %v263_v29  ;;  %v273_v37 = vmul.f32 %v1116_v7, %v272_v34  ;;  %v279_v38 = vmul.f32 %v278_v35, %v1102_v4  ;;  %v280_v39 = vstv %s1123_s28 }
  0x50   : > { %1800 = sst [smem:[#allocation21_spill]] %s1123_s28  ;;  %s1192_s24 = sld [smem:[#allocation3 + $0x12]]  ;;  %v281_v40 = vmul.f32 %v1116_v7, %v280_v39  ;;  %v286_v41 = vstv %s1125_s29  ;;  %v288_v42 = vstv %s1132_s30  ;;  %v294_v43 = vstv %s1134_s3 }
  0x51   : > { %1801 = sst [smem:[#allocation22_spill]] %s1125_s29  ;;  %s1194_s14 = sld [smem:[#allocation3 + $0x1b]]  ;;  %v235_v44 = vstv %s1154_s6  ;;  %v274_v45 = vadd.f32 %v273_v37, %v271_v33  ;;  %v287_v46 = vmul.f32 %v286_v41, %v1102_v4  ;;  %v289_v47 = vmul.f32 %v1116_v7, %v288_v42 }
  0x52   : > { %1802 = sst [smem:[#allocation23_spill]] %s1132_s30  ;;  %s1203_s2 = sld [smem:[#allocation3 + $0x13]]  ;;  %v1228_v48 = vadd.f32 %v235_v44, %v234_v20  ;;  %v243_v49 = vstv %s1163_s17  ;;  %v251_v50 = vstv %s1165_s1  ;;  %v282_v51 = vadd.f32 %v281_v40, %v279_v38 }
  0x53   : > { %1803 = sst [smem:[#allocation24_spill]] %s1134_s3  ;;  %s1205_s23 = sld [smem:[#allocation3 + $0x1c]]  ;;  %v1238_v52 = vadd.f32 %v243_v49, %v242_v24  ;;  %v1242_v53 = vadd.f32 %v251_v50, %v250_v28  ;;  %v259_v54 = vstv %s1172_s22  ;;  %v267_v55 = vstv %s1174_s0 }
  0x54   : > { %1804 = sst [smem:[#allocation25_spill]] %s1152_s5  ;;  %s1213_s16 = sld [smem:[#allocation3 + $0x1d]]  ;;  %v237_v56 = vmax.f32 %v1228_v48, 0.0  ;;  %v1251_v57 = vadd.f32 %v259_v54, %v258_v32  ;;  %v1255_v58 = vadd.f32 %v267_v55, %v266_v36  ;;  %v275_v59 = vstv %s1183_s15 }
  0x55   : > { %1805 = sst [smem:[#allocation26_spill]] %s1163_s17  ;;  %s1215_s4 = sld [smem:[#allocation3 + $0x1e]]  ;;  %v245_v60 = vmax.f32 %v1238_v52, 0.0  ;;  %v253_v61 = vmax.f32 %v1242_v53, 0.0  ;;  %v1266_v62 = vadd.f32 %v275_v59, %v274_v45  ;;  %v283_v63 = vstv %s1185_s19 }
  0x56   : > { %1806 = sst [smem:[#allocation27_spill]] %s1165_s1  ;;  %s1224_s28 = sld [smem:[#allocation3 + $0x1f]]  ;;  %v261_v0 = vmax.f32 %v1251_v57, 0.0  ;;  %v269_v1 = vmax.f32 %v1255_v58, 0.0  ;;  %v1275_v2 = vadd.f32 %v283_v63, %v282_v51  ;;  %v290_v3 = vadd.f32 %v289_v47, %v287_v46 }
  0x57   : > { %1807 = sst [smem:[#allocation28_spill]] %s1172_s22  ;;  %s1232_s27 = sld [smem:[#allocation3 + $0x20]]  ;;  %v277_v5 = vmax.f32 %v1266_v62, 0.0  ;;  %v1774_v8 = vstv %s1194_s14  ;;  %v295_v12 = vmul.f32 %v294_v43, %v1102_v4  ;;  %v296_v13 = vstv %s1152_s5 }
  0x58   : > { %1808 = sst [smem:[#allocation29_spill]] %s1174_s0  ;;  %s1234_s29 = sld [smem:[#allocation3 + $0x21]]  ;;  %v285_v16 = vmax.f32 %v1275_v2, 0.0  ;;  %v1290_v17 = vadd.f32 %v1774_v8, %v290_v3  ;;  %v297_v20 = vmul.f32 %v1116_v7, %v296_v13  ;;  %v302_v22 = vstv %s1192_s24 }
  0x59   : > { %1809 = sst [smem:[#allocation30_spill]] %s1183_s15  ;;  %s1246_s30 = sld [smem:[#allocation3 + $0x22]]  ;;  %v1768_v21 = vstv %s1205_s23  ;;  %v304_v24 = vstv %s1203_s2  ;;  %v303_v32 = vmul.f32 %v302_v22, %v1102_v4 }
  0x5a   : > { %1810 = sst [smem:[#allocation31_spill]] %s1185_s19  ;;  %s1258_s26 = sld [smem:[#allocation3 + $0x23]]  ;;  %v1764_v25 = vstv %s1213_s16  ;;  %v293_v29 = vmax.f32 %v1290_v17, 0.0  ;;  %v298_v30 = vadd.f32 %v297_v20, %v295_v12  ;;  %v305_v33 = vmul.f32 %v1116_v7, %v304_v24 }
  0x5b   : > { %1811 = sst [smem:[#allocation32_spill]] %s1192_s24  ;;  %s1260_s25 = sld [smem:[#allocation3 + $0x24]]  ;;  %v310_v28 = vstv %s1215_s4 }
  0x5c   : > { %1812 = sst [smem:[#allocation33_spill]] %s1194_s14  ;;  %s1269_s0 = sld [smem:[#allocation3 + $0x25]]  ;;  %v311_v36 = vmul.f32 %v310_v28, %v237_v56  ;;  %v1773_v37 = vstv %s1224_s28  ;;  %v300_v7 = vadd.f32 %v1768_v21, %v298_v30  ;;  %v306_v40 = vadd.f32 %v305_v33, %v303_v32 }
  0x5d   : > { %1813 = sst [smem:[#allocation34_spill]] %s1203_s2  ;;  %s1277_s15 = sld [smem:[#allocation3 + $0x26]]  ;;  %v1769_v38 = vstv %s1232_s27  ;;  %v313_v45 = vmul.f32 %v1773_v37, %v245_v60 }
  0x5e   : > { %1814 = sst [smem:[#allocation35_spill]] %s1205_s23  ;;  %s1279_s22 = sld [smem:[#allocation3 + $0x27]]  ;;  %v1766_v4 = vstv %s1234_s29  ;;  %v315_v46 = vmul.f32 %v1769_v38, %v253_v61  ;;  %v301_v20 = vmax.f32 %v300_v7, 0.0  ;;  %v308_v30 = vadd.f32 %v1764_v25, %v306_v40 }
  0x5f   : > { %1815 = sst [smem:[#allocation36_spill]] %s1215_s4  ;;  %s1296_s19 = sld [smem:[#allocation3 + $0x28]]  ;;  %v317_v47 = vmul.f32 %v1766_v4, %v261_v0  ;;  %v1765_v51 = vstv %s1246_s30  ;;  %v330_v38 = vadd.f32 %v313_v45, %v311_v36 }
  0x60   : > { %1816 = sst [smem:[#allocation37_spill]] %s1234_s29  ;;  %s1302_s3 = sld [smem:[#allocation3 + $0x29]]  ;;  %v1767_v3 = vstv %s1258_s26  ;;  %v319_v32 = vmul.f32 %v1765_v51, %v269_v1  ;;  %v309_v4 = vmax.f32 %v308_v30, 0.0 }
  0x61   : > { %1817 = sst [smem:[#allocation38_spill]] %s1258_s26  ;;  %s1304_s14 = sld [smem:[#allocation3 + $0x32]]  ;;  %v1772_v12 = vstv %s1260_s25  ;;  %v321_v33 = vmul.f32 %v1767_v3, %v277_v5 }
  0x62   : > { %1818 = sst [smem:[#allocation39_spill]] %s1260_s25  ;;  %s1313_s5 = sld [smem:[#allocation3 + $0x2a]]  ;;  %v323_v7 = vmul.f32 %v1772_v12, %v285_v16  ;;  %v324_v40 = vstv %s1269_s0  ;;  %v331_v12 = vadd.f32 %v317_v47, %v315_v46 }
  0x63   : > { %1819 = sst [smem:[#allocation40_spill]] %s1269_s0  ;;  %s1315_s1 = sld [smem:[#allocation3 + $0x2b]]  ;;  %v1776_v25 = vstv %s1277_s15  ;;  %v325_v3 = vmul.f32 %v324_v40, %v293_v29  ;;  %v332_v37 = vadd.f32 %v321_v33, %v319_v32 }
  0x64   : > { %1820 = sst [smem:[#allocation41_spill]] %s1277_s15  ;;  %s1324_s2 = sld [smem:[#allocation3 + $0x2c]]  ;;  %v328_v51 = vstv %s1279_s22  ;;  %v327_v21 = vmul.f32 %v1776_v25, %v301_v20  ;;  %v335_v47 = vadd.f32 %v331_v12, %v330_v38 }
  0x65   : > { %s1326_s24 = sld [smem:[#allocation3 + $0x2d]]  ;;  %s1338_s4 = sld [smem:[#allocation3 + $0x2e]]  ;;  %v1779_v30 = vstv %s1296_s19  ;;  %v329_v25 = vmul.f32 %v328_v51, %v309_v4  ;;  %v333_v36 = vadd.f32 %v325_v3, %v323_v7 }
  0x66   : > { %s1340_s17 = sld [smem:[#allocation3 + $0x2f]]  ;;  %s1359_s29 = sld [smem:[#allocation3 + $0x30]]  ;;  %v343_v45 = vmul.f32 %v1779_v30, %v237_v56  ;;  %v1778_v46 = vstv %s1302_s3 }
  0x67   : > { %1821 = sst [smem:[#allocation42_spill]] %s1304_s14  ;;  %s1361_s23 = sld [smem:[#allocation3 + $0x31]]  ;;  %v339_v8 = vstv %s1304_s14  ;;  %v345_v32 = vmul.f32 %v1778_v46, %v245_v60  ;;  %v334_v7 = vadd.f32 %v329_v25, %v327_v21  ;;  %v336_v48 = vadd.f32 %v333_v36, %v332_v37 }
  0x68   : > { %s1376_s26 = sld [smem:[#allocation3 + $0x33]]  ;;  %s1378_s25 = sld [smem:[#allocation3 + $0x34]]  ;;  %v346_v33 = vstv %s1313_s5 }
  0x69   : > { %s1382_s0 = sld [smem:[#allocation3 + $0x35]]  ;;  %s1391_s15 = sld [smem:[#allocation3 + $0x36]]  ;;  %v348_v3 = vstv %s1315_s1  ;;  %v347_v56 = vmul.f32 %v346_v33, %v253_v61  ;;  %v337_v30 = vadd.f32 %v336_v48, %v335_v47  ;;  %v362_v58 = vadd.f32 %v345_v32, %v343_v45 }
  0x6a   : > { %v349_v38 = vmul.f32 %v348_v3, %v261_v0  ;;  %v350_v52 = vstv %s1324_s2  ;;  %v495_v48 = vmul.f32 %v1109_v6, %v238_v10  ;;  %v505_v10 = vmul.f32 %v1109_v6, %v254_v19  ;;  %s1842_s7 = sld [smem:[#allocation35_spill]]  ;;  %s1843_s8 = sld [smem:[#allocation37_spill]] }
  0x6b   : > { %v352_v12 = vstv %s1326_s24  ;;  %v354_v60 = vstv %s1338_s4  ;;  %v351_v53 = vmul.f32 %v350_v52, %v269_v1  ;;  %v338_v1 = vadd.f32 %v337_v30, %v334_v7  ;;  %s1844_s9 = sld [smem:[#allocation38_spill]]  ;;  %s1846_s10 = sld [smem:[#allocation39_spill]] }
  0x6c   : > { %1822 = sst [smem:[#allocation43_spill]] %s1359_s29  ;;  %v356_v46 = vstv %s1340_s17  ;;  %v353_v57 = vmul.f32 %v352_v12, %v277_v5  ;;  %v355_v61 = vmul.f32 %v354_v60, %v285_v16  ;;  %v358_v21 = vstv %s1359_s29  ;;  %v844_v16 = vld [vmem:[%s1099_s13 + $0x18] sm:$0xff]  ;;  %s1841_s13 = sld [smem:[#allocation33_spill]] }
  0x6d   : > { %1823 = sst [smem:[#allocation44_spill]] %s1361_s23  ;;  %v357_v0 = vmul.f32 %v356_v46, %v293_v29  ;;  %v360_v25 = vstv %s1361_s23  ;;  %v359_v62 = vmul.f32 %v358_v21, %v301_v20  ;;  %v363_v2 = vadd.f32 %v349_v38, %v347_v56  ;;  %s1851_s12 = sld [smem:[#allocation41_spill]] }
  0x6e   : > { %v361_v5 = vmul.f32 %v360_v25, %v309_v4  ;;  %v364_v17 = vadd.f32 %v353_v57, %v351_v53  ;;  %v371_v29 = vstv %s1376_s26  ;;  %v374_v36 = vstv %s1378_s25  ;;  %s1865_s2 = sld [smem:[#allocation17_spill]]  ;;  %s1866_s17 = sld [smem:[#allocation12_spill]] }
  0x6f   : > { %v365_v37 = vadd.f32 %v357_v0, %v355_v61  ;;  %v340_v45 = vadd.f32 %v339_v8, %v338_v1  ;;  %v367_v47 = vadd.f32 %v363_v2, %v362_v58  ;;  %v376_v32 = vstv %s1382_s0  ;;  %s1006_s18 = smov [#allocation5]  }
  0x70   : > { %v366_v30 = vadd.f32 %v361_v5, %v359_v62  ;;  %v379_v4 = vstv %s1391_s15  ;;  %v491_v7 = vmul.f32 %v844_v16, %v232_v9  ;;  %v496_v38 = vmul.f32 %v844_v16, %v240_v14  ;;  %s937_s20 = sshll.u32 %s1006_s18, 4  ;;  %s938_s20 = int_to_ptr.vmem [resolvable:$false] %s937_s20 }
  0x71   : > { %v368_v20 = vadd.f32 %v365_v37, %v364_v17  ;;  %v341_v56 = vmax.f32 %v340_v45, 0.0  ;;  %v500_v53 = vmul.f32 %v1109_v6, %v246_v15  ;;  %v501_v57 = vmul.f32 %v844_v16, %v248_v18  ;;  %s939_s14 = scalar_lea.vmem %s938_s20, 512 }
  0x72   : > { %v492_v9 = vadd.f32 %v491_v7, %v1130_v11  ;;  %v506_v0 = vmul.f32 %v844_v16, %v256_v23  ;;  %v497_v58 = vadd.f32 %v496_v38, %v495_v48  ;;  %v510_v15 = vmul.f32 %v1109_v6, %v262_v26 }
  0x73   : > { %v369_v61 = vadd.f32 %v368_v20, %v367_v47  ;;  %v375_v14 = vmul.f32 %v374_v36, %v341_v56  ;;  %v502_v1 = vadd.f32 %v501_v57, %v500_v53  ;;  %v511_v11 = vmul.f32 %v844_v16, %v264_v27 }
  0x74   : > { %v1465_v62 = vadd.f32 %v492_v9, %v235_v44  ;;  %v507_v5 = vadd.f32 %v506_v0, %v505_v10  ;;  %v1471_v19 = vadd.f32 %v497_v58, %v243_v49  ;;  %v515_v26 = vmul.f32 %v1109_v6, %v270_v31  ;;  %s783_s15 = sshll.u32 %s1865_s2, 4 }
  0x75   : > { %v370_v18 = vadd.f32 %v369_v61, %v366_v30  ;;  %v1475_v23 = vadd.f32 %v502_v1, %v251_v50  ;;  %v516_v44 = vmul.f32 %v844_v16, %v272_v34  ;;  %v512_v17 = vadd.f32 %v511_v11, %v510_v15  ;;  %s1666_s0 = scalar_lea.vmem [#allocation5], %s783_s15 }
  0x76   : > { %v494_v27 = vmax.f32 %v1465_v62, 0.0  ;;  %v508_v49 = vadd.f32 %v507_v5, %v259_v54  ;;  %v499_v50 = vmax.f32 %v1471_v19, 0.0  ;;  %v520_v31 = vmul.f32 %v1109_v6, %v278_v35  ;;  %s705_s4 = sshll.u32 %s1666_s0, 4  ;;  %s1683_s4 = int_to_ptr.vmem [resolvable:$true] %s705_s4 }
  0x77   : > { %v372_v2 = vadd.f32 %v371_v29, %v370_v18  ;;  %v504_v37 = vmax.f32 %v1475_v23, 0.0  ;;  %v517_v45 = vadd.f32 %v516_v44, %v515_v26  ;;  %v513_v47 = vadd.f32 %v512_v17, %v267_v55  ;;  %s933_s5 = scalar_lea.vmem %s1683_s4, 256  ;;  %p940_p7 = scmp.lt.s32.totalorder %s1683_s4, %s938_s20 }
  0x78   : > { %v509_v30 = vmax.f32 %v508_v49, 0.0  ;;  %v521_v20 = vmul.f32 %v844_v16, %v280_v39  ;;  %v525_v7 = vmul.f32 %v1109_v6, %v286_v41  ;;  %v526_v48 = vmul.f32 %v844_v16, %v288_v42  ;;  %p934_p4 = scmp.ne.s32.totalorder %s1683_s4, %s933_s5  ;;  %p941_p8 = scmp.lt.s32.totalorder %s939_s14, %s933_s5 }
  0x79   : > { %v373_v34 = vmax.f32 %v372_v2, 0.0  ;;  %v518_v54 = vadd.f32 %v517_v45, %v275_v59  ;;  %v530_v35 = vmul.f32 %v1109_v6, %v294_v43  ;;  %v514_v55 = vmax.f32 %v513_v47, 0.0 }
  0x7a   : > { %v522_v38 = vadd.f32 %v521_v20, %v520_v31  ;;  %v531_v39 = vmul.f32 %v844_v16, %v296_v13  ;;  %v527_v53 = vadd.f32 %v526_v48, %v525_v7  ;;  %v535_v41 = vmul.f32 %v1109_v6, %v302_v22  ;;  %p935_p5 = pnand %p934_p4, %p1065_p11  ;;  %p942_p9 = por %p941_p8, %p940_p7 }
  0x7b   : > { %v377_v56 = vmul.f32 %v376_v32, %v373_v34  ;;  %v519_v59 = vmax.f32 %v518_v54, 0.0  ;;  %v536_v42 = vmul.f32 %v844_v16, %v304_v24  ;;  %v540_v9 = vmul.f32 %v494_v27, %v310_v28 }
  0x7c   : > { %v523_v57 = vadd.f32 %v522_v38, %v283_v63  ;;  %v532_v61 = vadd.f32 %v531_v39, %v530_v35  ;;  %v1845_v10 = vstv %s1841_s13  ;;  %v1847_v58 = vstv %s1224_s28  ;;  %s1869_s28 = sld [smem:[#allocation46_spill]]  ;;  %p936_p6 = pneg %p935_p5 }
  0x7d   : > { %v378_v43 = vadd.f32 %v377_v56, %v375_v14  ;;  %v528_v0 = vadd.f32 %v527_v53, %v1845_v10  ;;  %v537_v13 = vadd.f32 %v536_v42, %v535_v41  ;;  %v541_v1 = vmul.f32 %v499_v50, %v1847_v58 }
  0x7e   : > { %v1849_v15 = vstv %s1232_s27  ;;  %v524_v22 = vmax.f32 %v523_v57, 0.0  ;;  %v1850_v24 = vstv %s1842_s7  ;;  %v1852_v63 = vstv %s1843_s8  ;;  %p943_p10 = pnand %p942_p9, %p936_p6 }
  0x7f   : > { %v542_v18 = vmul.f32 %v504_v37, %v1849_v15  ;;  %v1527_v6 = vadd.f32 %v379_v4, %v378_v43  ;;  %v533_v16 = vadd.f32 %v532_v61, %v1850_v24  ;;  %v543_v14 = vmul.f32 %v509_v30, %v1852_v63 }
  0x80   : > { %v529_v28 = vmax.f32 %v528_v0, 0.0  ;;  %v1853_v62 = vstv %s1213_s16  ;;  %v1854_v11 = vstv %s1246_s30  ;;  %v1855_v23 = vstv %s1844_s9 }
  0x81   : > { %v538_v5 = vadd.f32 %v537_v13, %v1853_v62  ;;  %v544_v19 = vmul.f32 %v514_v55, %v1854_v11  ;;  %v545_v26 = vmul.f32 %v519_v59, %v1855_v23  ;;  %v381_v44 = vand.u32 2147483647, %v1527_v6 }
  0x82   : > { %v384_v2 = vand.u32 2139095040, %v1527_v6  ;;  %v534_v49 = vmax.f32 %v533_v16, 0.0  ;;  %v1856_v45 = vstv %s1846_s10  ;;  %v547_v34 = vmul.f32 %v529_v28, %v324_v40 }
  0x83   : > { %v539_v17 = vmax.f32 %v538_v5, 0.0  ;;  %v546_v31 = vmul.f32 %v524_v22, %v1856_v45  ;;  %v388_v20 = vand.u32 8388607, %v381_v44  ;;  %v550_v54 = vadd.f32 %v541_v1, %v540_v9 }
  0x84   : > { %v385_v47 = vshrl.u32 %v384_v2, 23  ;;  %v1857_v7 = vstv %s1851_s12  ;;  %v551_v56 = vadd.f32 %v543_v14, %v542_v18  ;;  %v552_v38 = vadd.f32 %v545_v26, %v544_v19 }
  0x85   : > { %v548_v48 = vmul.f32 %v534_v49, %v1857_v7  ;;  %v549_v35 = vmul.f32 %v539_v17, %v328_v51  ;;  %v389_v53 = vor.u32 8388608, %v388_v20  ;;  %v553_v40 = vadd.f32 %v547_v34, %v546_v31 }
  0x86   : > { %v839_v39 = vadd.s32 4294967169, %v385_v47  ;;  %v555_v41 = vadd.f32 %v551_v56, %v550_v54  ;;  %v1859_v42 = vstv %s1296_s19  ;;  %v1861_v57 = vstv %s1302_s3  ;;  %s1867_s19 = sadd.s32 4294967295, %s1866_s17   ;;  %s692_s3 = scalar_lea.sflag [#allocation6], %s1865_s2 }
  0x87   : > { %v561_v43 = vmul.f32 %v494_v27, %v1859_v42  ;;  %v562_v61 = vmul.f32 %v499_v50, %v1861_v57  ;;  %v563_v9 = vmul.f32 %v504_v37, %v346_v33  ;;  %v554_v0 = vadd.f32 %v549_v35, %v548_v48  ;;  %s856_s24 = sshll.u32 %s1867_s19, 8 }
  0x88   : > { %v391_v10 = vadd.s32 1, %v839_v39  ;;  %v556_v13 = vadd.f32 %v553_v40, %v552_v38  ;;  %v564_v51 = vmul.f32 %v509_v30, %v348_v3  ;;  %v565_v58 = vmul.f32 %v514_v55, %v350_v52  ;;  %s1681_s30 = scalar_lea.hbm %s1869_s28, %s856_s24 }
  0x89   : > { %v566_v1 = vmul.f32 %v519_v59, %v352_v12  ;;  %v567_v15 = vmul.f32 %v524_v22, %v354_v60  ;;  %v568_v18 = vmul.f32 %v529_v28, %v356_v46  ;;  %v569_v27 = vmul.f32 %v534_v49, %v358_v21 }
  0x8a   : > { %vm392_vm0 = vcmp.gt.s32.totalorder %v391_v10, 0  ;;  %v557_v24 = vadd.f32 %v556_v13, %v555_v41  ;;  %v570_v33 = vmul.f32 %v539_v17, %v360_v25  ;;  %v571_v37 = vadd.f32 %v562_v61, %v561_v43 }
  0x8b   : > { %v393_v50 = vsel %vm392_vm0, %v391_v10, 0  ;;  %v572_v16 = vadd.f32 %v564_v51, %v563_v9  ;;  %v1571_v14 = vshll.u32 %v389_v53, 8  ;;  %v573_v30 = vadd.f32 %v566_v1, %v565_v58 }
  0x8c   : > { %v395_v63 = vand.u32 31, %v393_v50  ;;  %v394_v3 = vshrl.u32 %v393_v50, 5  ;;  %v558_v52 = vadd.f32 %v557_v24, %v554_v0  ;;  %v574_v12 = vadd.f32 %v568_v18, %v567_v15 }
  0x8d   : > { %v1000_v60 = vmov 683565275   ;;  %v1001_v59 = vmov 2475754826   ;;  %v1002_v21 = vmov 2131351028   ;;  %v575_v19 = vadd.f32 %v570_v33, %v569_v27 }
  0x8e   : > { %v396_v55 = vsub.s32 32, %v395_v63  ;;  %v398_v46 = vshll.u32 %v1000_v60, %v395_v63  ;;  %v401_v22 = vshll.u32 %v1001_v59, %v395_v63  ;;  %v404_v28 = vshll.u32 %v1002_v21, %v395_v63 }
  0x8f   : > { %v1003_v25 = vmov 2102212464   ;;  %v1004_v5 = vmov 920167782   ;;  %v576_v23 = vadd.f32 %v572_v16, %v571_v37  ;;  %v1005_v31 = vmov 1326507024  }
  0x90   : > { %v407_v62 = vshll.u32 %v1003_v25, %v395_v63  ;;  %v410_v11 = vshll.u32 %v1004_v5, %v395_v63  ;;  %v397_v26 = vshrl.u32 %v1000_v60, %v396_v55  ;;  %v399_v2 = vshrl.u32 %v1001_v59, %v396_v55 }
  0x91   : > { %v402_v49 = vshrl.u32 %v1002_v21, %v396_v55  ;;  %v405_v17 = vshrl.u32 %v1003_v25, %v396_v55  ;;  %v408_v45 = vshrl.u32 %v1004_v5, %v396_v55  ;;  %v411_v34 = vshrl.u32 %v1005_v31, %v396_v55 }
  0x92   : > { %vm413_vm1 = vcmp.lt.s32.totalorder %v394_v3, 1  ;;  %vm414_vm2 = vcmp.lt.s32.totalorder %v394_v3, 2  ;;  %v400_v47 = vor.u32 %v399_v2, %v398_v46  ;;  %vm416_vm3 = vcmp.lt.s32.totalorder %v394_v3, 4 }
  0x93   : > { %v403_v20 = vor.u32 %v402_v49, %v401_v22  ;;  %v406_v54 = vor.u32 %v405_v17, %v404_v28  ;;  %v409_v7 = vor.u32 %v408_v45, %v407_v62  ;;  %v412_v48 = vor.u32 %v411_v34, %v410_v11 }
  0x94   : > { %vm415_vm4 = vcmp.lt.s32.totalorder %v394_v3, 3  ;;  %v577_v35 = vadd.f32 %v574_v12, %v573_v30  ;;  %v417_v56 = vsel %vm413_vm1, %v397_v26, %v400_v47  ;;  %v559_v43 = vadd.f32 %v558_v52, %v339_v8 }
  0x95   : > { %v418_v38 = vsel %vm416_vm3, %v406_v54, 2102212464  ;;  %v421_v39 = vsel %vm413_vm1, %v400_v47, %v403_v20  ;;  %v425_v53 = vsel %vm413_vm1, %v403_v20, %v406_v54  ;;  %v422_v41 = vsel %vm416_vm3, %v409_v7, 920167782 }
  0x96   : > { %v419_v40 = vsel %vm415_vm4, %v403_v20, %v418_v38  ;;  %v426_v42 = vsel %vm416_vm3, %v412_v48, 1326507024  ;;  %v423_v57 = vsel %vm415_vm4, %v406_v54, %v422_v41  ;;  %v578_v9 = vadd.f32 %v577_v35, %v576_v23 }
  0x97   : > { %v427_v61 = vsel %vm415_vm4, %v409_v7, %v426_v42  ;;  %v420_v10 = vsel %vm414_vm2, %v417_v56, %v419_v40  ;;  %v424_v0 = vsel %vm414_vm2, %v421_v39, %v423_v57  ;;  %v560_v8 = vmax.f32 %v559_v43, 0.0 }
  0x98   : > { %v428_v13 = vsel %vm414_vm2, %v425_v53, %v427_v61  ;;  %v1594_v1 = vmul.u32.u64.low %v1571_v14, %v424_v0  ;;  %v1595_v15 = vmul.u32.u64.high %v1571_v14, %v424_v0, %v1594_v1  ;;  %v579_v18 = vadd.f32 %v578_v9, %v575_v19 }
  0x99   : > { %v1590_v51 = vmul.u32.u64.low %v1571_v14, %v428_v13  ;;  %v1591_v58 = vmul.u32.u64.high %v1571_v14, %v428_v13, %v1590_v51  ;;  %v436_v24 = vmul.u32 %v1571_v14, %v420_v10  ;;  %v582_v37 = vmul.f32 %v560_v8, %v374_v36 }
  0x9a   : > { %v580_v27 = vadd.f32 %v579_v18, %v371_v29  ;;  %v439_v50 = vadd.s32 1, %v1595_v15  ;;  %vm383_vm12 = vcmp.lt.s32.totalorder %v1527_v6, 0  ;;  %vm1649_vm13 = vcmp.le.f32.partialorder %v381_v44, 0.7853982 }
  0x9b   : > { %vm438_vm5 = vc.u32 %v1591_v58, %v1594_v1  ;;  %v437_v17 = vadd.s32 %v1594_v1, %v1591_v58  ;;  %vm473_vm2 = vweird.f32 %v1527_v6 }
  0x9c   : > { %v581_v33 = vmax.f32 %v580_v27, 0.0  ;;  %v440_v16 = vsel %vm438_vm5, %v439_v50, %v1595_v15 }
  0x9d   : > { %v441_v63 = vadd.s32 %v440_v16, %v436_v24 }
  0x9e   : > { %v583_v3 = vmul.f32 %v581_v33, %v376_v32 }
  0x9f   : > { %v442_v52 = vadd.s32 536870912, %v441_v63 }
  0xa0   : > { %v584_v30 = vadd.f32 %v583_v3, %v582_v37 }
  0xa1   : > { %v1607_v12 = vshrl.u32 %v442_v52, 30 }
  0xa2   : > { %v1611_v14 = vadd.f32 %v584_v30, %v379_v4 }
  0xa3   : > { %v444_v29 = vshll.u32 %v1607_v12, 30 }
  0xa4   : > { %v586_v55 = vand.u32 2147483647, %v1611_v14  ;;  %v589_v46 = vand.u32 2139095040, %v1611_v14  ;;  %vm588_vm4 = vcmp.lt.s32.totalorder %v1611_v14, 0 }
  0xa5   : > { %v445_v22 = vsub.s32 %v441_v63, %v444_v29 }
  0xa6   : > { %v590_v36 = vshrl.u32 %v589_v46, 23  ;;  %v593_v62 = vand.u32 8388607, %v586_v55  ;;  %vm587_vm5 = vcmp.le.f32.partialorder %v586_v55, 0.7853982 }
  0xa7   : > { %v447_v28 = vsub.s32 0, %v445_v22 }
  0xa8   : > { %v845_v32 = vadd.s32 4294967169, %v590_v36  ;;  %v594_v26 = vor.u32 8388608, %v593_v62  ;;  %v467_v62 = vsub.s32 4, %v1607_v12 }
  0xa9   : > { %v840_v11 = vmin.u32 %v447_v28, %v445_v22 }
  0xaa   : > { %v596_v19 = vadd.s32 1, %v845_v32  ;;  %v1619_v34 = vshll.u32 %v594_v26, 8  ;;  %v468_v44 = vsel %vm383_vm12, %v467_v62, %v1607_v12 }
  0xab   : > { %v449_v23 = vclz %v840_v11 }
  0xac   : > { %vm597_vm6 = vcmp.gt.s32.totalorder %v596_v19, 0 }
  0xad   : > { %v841_v4 = vadd.s32 4294967294, %v449_v23  ;;  %v598_v2 = vsel %vm597_vm6, %v596_v19, 0 }
  0xae   : > { %v600_v49 = vand.u32 31, %v598_v2  ;;  %v599_v45 = vshrl.u32 %v598_v2, 5  ;;  %v470_v2 = vsel %vm1649_vm13, 0, %v468_v44 }
  0xaf   : > { %vm842_vm7 = vcmp.lt.s32.totalorder %v841_v4, 0 }
  0xb0   : > { %v452_v47 = vsel %vm842_vm7, 0, %v841_v4  ;;  %v601_v20 = vsub.s32 32, %v600_v49  ;;  %v603_v54 = vshll.u32 %v1000_v60, %v600_v49  ;;  %v606_v7 = vshll.u32 %v1001_v59, %v600_v49 }
  0xb1   : > { %v453_v48 = vsub.s32 32, %v452_v47  ;;  %v454_v35 = vshll.u32 %v445_v22, %v452_v47  ;;  %v457_v56 = vsub.s32 4294967266, %v452_v47  ;;  %v609_v38 = vshll.u32 %v1002_v21, %v600_v49 }
  0xb2   : > { %v602_v39 = vshrl.u32 %v1000_v60, %v601_v20  ;;  %v604_v53 = vshrl.u32 %v1001_v59, %v601_v20  ;;  %v607_v40 = vshrl.u32 %v1002_v21, %v601_v20  ;;  %v610_v41 = vshrl.u32 %v1003_v25, %v601_v20 }
  0xb3   : > { %v455_v42 = vshrl.u32 %v437_v17, %v453_v48  ;;  %v458_v43 = vadd.s32 127, %v457_v56  ;;  %v612_v57 = vshll.u32 %v1003_v25, %v600_v49  ;;  %v613_v61 = vshrl.u32 %v1004_v5, %v601_v20 }
  0xb4   : > { %v605_v9 = vor.u32 %v604_v53, %v603_v54  ;;  %v608_v10 = vor.u32 %v607_v40, %v606_v7  ;;  %v611_v0 = vor.u32 %v610_v41, %v609_v38  ;;  %v615_v13 = vshll.u32 %v1004_v5, %v600_v49 }
  0xb5   : > { %v456_v51 = vor.u32 %v455_v42, %v454_v35  ;;  %v459_v58 = vshll.u32 %v458_v43, 23  ;;  %v614_v60 = vor.u32 %v613_v61, %v612_v57  ;;  %v616_v59 = vshrl.u32 %v1005_v31, %v601_v20 }
  0xb6   : > { %vm618_vm8 = vcmp.lt.s32.totalorder %v599_v45, 1  ;;  %vm619_vm9 = vcmp.lt.s32.totalorder %v599_v45, 2  ;;  %vm620_vm10 = vcmp.lt.s32.totalorder %v599_v45, 3  ;;  %vm621_vm11 = vcmp.lt.s32.totalorder %v599_v45, 4 }
  0xb7   : > { %v460_v21 = vor.u32 4788187, %v459_v58  ;;  %v463_v1 = vcvt.s32.f32 %v456_v51  ;;  %v617_v15 = vor.u32 %v616_v59, %v615_v13  ;;  %v622_v25 = vsel %vm618_vm8, %v602_v39, %v605_v9 }
  0xb8   : > { %v623_v8 = vsel %vm621_vm11, %v611_v0, 2102212464  ;;  %v626_v18 = vsel %vm618_vm8, %v605_v9, %v608_v10  ;;  %v627_v24 = vsel %vm621_vm11, %v614_v60, 920167782  ;;  %v630_v27 = vsel %vm618_vm8, %v608_v10, %v611_v0 }
  0xb9   : > { %v461_v50 = vand.u32 2147483647, %v460_v21  ;;  %v624_v5 = vsel %vm620_vm10, %v608_v10, %v623_v8  ;;  %v628_v33 = vsel %vm620_vm10, %v611_v0, %v627_v24  ;;  %v631_v37 = vsel %vm621_vm11, %v617_v15, 1326507024 }
  0xba   : > { %v625_v31 = vsel %vm619_vm9, %v622_v25, %v624_v5  ;;  %v629_v16 = vsel %vm619_vm9, %v626_v18, %v628_v33  ;;  %v632_v63 = vsel %vm620_vm10, %v614_v60, %v631_v37  ;;  %v474_v45 = vand.u32 3, %v470_v2 }
  0xbb   : > { %v464_v3 = vmul.f32 %v463_v1, %v461_v50  ;;  %v633_v52 = vsel %vm619_vm9, %v630_v27, %v632_v63  ;;  %v1639_v30 = vmul.u32.u64.low %v1619_v34, %v629_v16  ;;  %v1640_v29 = vmul.u32.u64.high %v1619_v34, %v629_v16, %v1639_v30 }
  0xbc   : > { %v1644_v46 = vmul.u32.u64.low %v1619_v34, %v633_v52  ;;  %v1645_v22 = vmul.u32.u64.high %v1619_v34, %v633_v52, %v1644_v46  ;;  %v641_v32 = vmul.u32 %v1619_v34, %v625_v31  ;;  %vm479_vm15 = vcmp.eq.s32.totalorder %v474_v45, 2 }
  0xbd   : > { %v465_v28 = vxor.u32 2147483648, %v464_v3  ;;  %v644_v19 = vadd.s32 1, %v1640_v29  ;;  %vm476_vm0 = vcmp.eq.s32.totalorder %v474_v45, 0  ;;  %vm475_vm1 = vcmp.lt.s32.totalorder %v474_v45, 2 }
  0xbe   : > { %vm643_vm14 = vc.u32 %v1645_v22, %v1639_v30  ;;  %v642_v42 = vadd.s32 %v1639_v30, %v1645_v22  ;;  %vm678_vm9 = vweird.f32 %v1611_v14 }
  0xbf   : > { %v466_v11 = vsel %vm383_vm12, %v465_v28, %v464_v3  ;;  %v645_v26 = vsel %vm643_vm14, %v644_v19, %v1640_v29 }
  0xc0   : > { %v469_v23 = vsel %vm1649_vm13, %v1527_v6, %v466_v11  ;;  %v646_v4 = vadd.s32 %v645_v26, %v641_v32 }
  0xc1   : > { %913 = vcosq.f32 %v469_v23 }
  0xc2   : > { %915 = vsinq.f32 %v469_v23  ;;  %v647_v49 = vadd.s32 536870912, %v646_v4 }
  0xc4   : > { %v648_v17 = vshrl.u32 %v647_v49, 30 }
  0xc6   : > { %v649_v34 = vshll.u32 %v648_v17, 30  ;;  %v672_v1 = vsub.s32 4, %v648_v17 }
  0xc8   : > { %v650_v47 = vsub.s32 %v646_v4, %v649_v34  ;;  %v673_v8 = vsel %vm588_vm4, %v672_v1, %v648_v17 }
  0xc9   : > { %v675_v18 = vsel %vm587_vm5, 0, %v673_v8 }
  0xca   : > { %v652_v12 = vsub.s32 0, %v650_v47  ;;  %v679_v24 = vand.u32 3, %v675_v18 }
  0xcb   : > { %v914_v20 = vpop.eup %913 }
  0xcc   : > { %v916_v54 = vpop.eup %915  ;;  %v480_v7 = vxor.u32 2147483648, %v914_v20  ;;  %v846_v56 = vmin.u32 %v652_v12, %v650_v47  ;;  %vm684_vm6 = vcmp.eq.s32.totalorder %v679_v24, 2  ;;  %vm681_vm7 = vcmp.eq.s32.totalorder %v679_v24, 0 }
  0xcd   : > { %v477_v48 = vxor.u32 2147483648, %v916_v54  ;;  %vm680_vm8 = vcmp.lt.s32.totalorder %v679_v24, 2 }
  0xce   : > { %v481_v35 = vsel %vm479_vm15, %v480_v7, %v916_v54  ;;  %v654_v53 = vclz %v846_v56 }
  0xcf   : > { %v478_v38 = vsel %vm476_vm0, %v914_v20, %v477_v48 }
  0xd0   : > { %v482_v39 = vsel %vm475_vm1, %v478_v38, %v481_v35  ;;  %v847_v41 = vadd.s32 4294967294, %v654_v53 }
  0xd1   : > { %v483_v40 = vsel %vm473_vm2, nan, %v482_v39 }
  0xd2   : > { %484 = vst [vmem:[%s1666_s0] sm:$0xff] %v483_v40  ;;  %vm848_vm3 = vcmp.lt.s32.totalorder %v847_v41, 0 }
  0xd3   : > { %v657_v43 = vsel %vm848_vm3, 0, %v847_v41 }
  0xd4   : > { %v658_v57 = vsub.s32 32, %v657_v43  ;;  %v659_v61 = vshll.u32 %v650_v47, %v657_v43  ;;  %v662_v9 = vsub.s32 4294967266, %v657_v43 }
  0xd6   : > { %v660_v10 = vshrl.u32 %v642_v42, %v658_v57  ;;  %v663_v6 = vadd.s32 127, %v662_v9 }
  0xd8   : > { %v661_v0 = vor.u32 %v660_v10, %v659_v61  ;;  %v664_v13 = vshll.u32 %v663_v6, 23 }
  0xda   : > { %v665_v51 = vor.u32 4788187, %v664_v13  ;;  %v668_v58 = vcvt.s32.f32 %v661_v0 }
  0xdc   : > { %v666_v60 = vand.u32 2147483647, %v665_v51 }
  0xde   : > { %v669_v59 = vmul.f32 %v668_v58, %v666_v60 }
  0xe0   : > { %v670_v21 = vxor.u32 2147483648, %v669_v59 }
  0xe2   : > { %v671_v15 = vsel %vm588_vm4, %v670_v21, %v669_v59 }
  0xe3   : > { %v674_v25 = vsel %vm587_vm5, %v1611_v14, %v671_v15 }
  0xe4   : > { %917 = vcosq.f32 %v674_v25 }
  0xe5   : > { %919 = vsinq.f32 %v674_v25 }
  0xee   : > { %v918_v27 = vpop.eup %917 }
  0xef   : > { %v920_v50 = vpop.eup %919  ;;  %v685_v5 = vxor.u32 2147483648, %v918_v27 }
  0xf0   : > { %v682_v55 = vxor.u32 2147483648, %v920_v50 }
  0xf1   : > { %v686_v33 = vsel %vm684_vm6, %v685_v5, %v920_v50 }
  0xf2   : > { %v683_v37 = vsel %vm681_vm7, %v918_v27, %v682_v55 }
  0xf3   : > { %v687_v31 = vsel %vm680_vm8, %v683_v37, %v686_v33 }
  0xf4   : > { %v688_v16 = vsel %vm678_vm9, nan, %v687_v31 }
  0xf5   : > { %849 = vst [vmem:[%s1666_s0 + $0x8] sm:$0xff] %v688_v16 }
  0xf6   : > { %946 = shalt.err (!%p943_p10)
}
  0xf7   : > { %s947_s23 = scalar_lea.hbm %s1681_s30, 256  ;;  %s951_s6 = scalar_lea.hbm %s1869_s28, 512 }
  0xf8   : > { %p948_p12 = scmp.ne.s32.totalorder %s1681_s30, %s947_s23  ;;  %p952_p3 = scmp.lt.u32.totalorder %s1681_s30, %s1869_s28 }
  0xf9   : > { %p953_p4 = scmp.lt.u32.totalorder %s951_s6, %s947_s23  ;;  %p955_p6 = scmp.lt.u32.totalorder %s947_s23, %s1681_s30 }
  0xfa   : > { %p949_p1 = pnand %p948_p12, %p1065_p11 }
  0xfb   : > { %p954_p5 = por %p953_p4, %p952_p3 }
  0xfc   : > { %p950_p2 = pneg %p949_p1 }
  0xfd   : > { %p956_p7 = por %p955_p6, %p954_p5 }
  0xff   : > { %p957_p8 = pnand %p956_p7, %p950_p2 }
 0x101   : > { %960 = shalt.err (!%p957_p8)
}
 0x102   : > { %s1007_s8 = smov 128   ;;  %s1008_s9 = smov 8  }
 0x103   : > { %865 = dma.vmem_to_hbm [thread:$0]  (%p1065_p11), %s1683_s4, 256, %s1681_s30, %s692_s3, %s1007_s8, %s1007_s8, %s1008_s9  }
 0x104 PF: > { %s1870_s10 = sld [smem:[#allocation9_spill]]  ;;  %p868_p9 = pnand %p777_p0, %p1069_p13 }
 0x10a   : > { %s720_s16 = sand.u32 1, %s1870_s10  }
 0x10b   : > { %s721_s27 = scalar_lea.sflag [#allocation6], %s720_s16 }
 0x10c   : > { %980 = dma.done.wait (!%p868_p9), %s721_s27, 256  }
 0x10d   : > { %982 = vsyncadd (!%p868_p9), %s721_s27, 4294967040  ;;  %s1873_s16 = sld [smem:[#allocation13_spill]]  ;;  %s1874_s14 = sld [smem:[#allocation10_spill]] }
 0x10e   : > { %s1875_s15 = sld [smem:[#allocation11_spill]]  ;;  %s1876_s0 = sld [smem:[#allocation14_spill]] }
 0x113   : > { %p18_p10 = scmp.ge.s32.totalorder %s1873_s16, 4  }
 0x115   :  { %20 = sbr.rel (!%p18_p10) target bundleno = 19 (0x13), region = 106 }
 0x11c   :  { %726 = vsyncpa [#allocation6], 1 }
 0x11d   :  { %728 = vsyncpa [#allocation6 + $0x1], 1 }

</bundles_post_ra>
